<compile_context>
chip_gen: v6e
topology: v6e:2x2x1
jax: 0.10.0
libtpu: 0.0.40
codegen_flags: <defaults>
</compile_context>

<pallas_src>
import jax
import jax.numpy as jnp
import numpy as np
from jax.experimental import pallas as pl
from jax.experimental.pallas import tpu as pltpu

# ----------------------------- toy config (consistent with the module) ------
DIM = 3          # input point dimension
C_DIM = 8        # latent code dimension (c_dim)
HIDDEN = 32      # hidden_size
N_BLOCKS = 5     # n_blocks (ResnetBlockFC count)
B = 2            # batch
T = 8            # number of query points
PLANE_RES = 16   # H = W of the 2D feature planes
GRID_RES = 8     # D = H = W of the 3D feature grid
OUT_PAD = 128    # lane padding of the fc_out column (lane-dense store)

# ----------------------------- tiling ---------------------------------------
# TODO(synk): production sizing -- T_TILE=256 (v6e/v7x, 2x256^2 MXU) or 128
# (v5e), S_TILE=4096 with S_CHUNK=512; mask chunk + 2x bf16 feat tile +
# accumulator + resident weights stays well under 8 MiB, which also fits
# v7x's 64 MiB physical VMEM.  At toy shapes the tiles below cover each source
# exactly (grid 8^3 -> 2 tiles, each 16^2 plane -> 1 tile).
S_TILE = 256     # feature-slab lanes per grid step (multiple of 128)
S_CHUNK = 256    # in-kernel sub-chunk of S_TILE (VPU/MXU interleave), <= S_TILE


# ============================================================================
# Kernel: per grid step (b, t_tile, s_tile) build the interpolation-weight
# mask for this S tile, contract against the bf16 feature tile into the
# resident c accumulator, and run the ResNet MLP at the last S step.
# ============================================================================
def _make_kernel(n_blocks, s_chunk):
    nt_dims = (((1,), (1,)), ((), ()))   # contract last dim of both (A @ B^T)

    def kernel(_src_map, coords_ref, cell_ref, feat_ref, p_ref,
               fcp_w, fcp_b, fcc_w, fcc_b, fc0_w, fc0_b, fc1_w, fc1_b,
               fco_w, fco_b, out_ref, c_acc):
        st = pl.program_id(2)

        @pl.when(st == 0)
        def _init():
            c_acc[...] = jnp.zeros_like(c_acc)

        # ---- N-linear interpolation mask for this S tile --------------------
        coords = coords_ref[...]                 # (T_t, 3) texel coords, border-clamped
        f0 = jnp.floor(coords)
        frac = coords - f0                       # (T_t, 3)
        i0 = f0.astype(jnp.int32)
        cell = cell_ref[...]                     # (3, S_TILE) int32, -1 in padded lanes

        s_tile = cell.shape[-1]
        for ck in range(s_tile // s_chunk):      # static; 1 iter at toy size
            lo = ck * s_chunk
            mask = None
            for a in range(3):                   # dummy 3rd axis for 2D planes: factor == 1
                cell_a = cell[a:a + 1, lo:lo + s_chunk]          # (1, S_CHUNK)
                i0_a = i0[:, a:a + 1]                            # (T_t, 1)
                w_a = frac[:, a:a + 1]                           # (T_t, 1)
                # single select chain (i1 = i0 + 1, unclamped: when the coord
                # sits on the last texel its weight is exactly 0)
                fa = jnp.where(cell_a == i0_a, 1.0 - w_a,
                               jnp.where(cell_a == i0_a + 1, w_a, 0.0))
                mask = fa if mask is None else mask * fa
            # (T_t, S_CHUNK) . (C, S_CHUNK)^T -> (T_t, C); bf16 MXU, f32 accumulate
            c_acc[...] += jax.lax.dot_general(
                mask.astype(jnp.bfloat16), feat_ref[:, lo:lo + s_chunk],
                nt_dims, preferred_element_type=jnp.float32)

        # ---- decoder MLP, once per (b, t_tile), at the last S step ----------
        @pl.when(st == pl.num_programs(2) - 1)
        def _mlp():
            relu = lambda x: jnp.maximum(x, 0.0)
            c = c_acc[...]
            net = jnp.dot(p_ref[...], fcp_w[...],
                          preferred_element_type=jnp.float32) + fcp_b[...]
            for i in range(n_blocks):            # static unroll
                net = net + (jnp.dot(c, fcc_w[i],
                                     preferred_element_type=jnp.float32)
                             + fcc_b[i:i + 1, :])
                # ResnetBlockFC (size_in == size_out -> identity shortcut)
                h = jnp.dot(relu(net), fc0_w[i],
                            preferred_element_type=jnp.float32) + fc0_b[i:i + 1, :]
                dx = jnp.dot(relu(h), fc1_w[i],
                             preferred_element_type=jnp.float32) + fc1_b[i:i + 1, :]
                net = net + dx
            out_ref[...] = jnp.dot(relu(net), fco_w[...],
                                   preferred_element_type=jnp.float32) + fco_b[...]

    return kernel


# ============================================================================
# Host-side source preparation (tiny metadata arrays; no feature transpose).
# ============================================================================
def _prep_sources(p_n, c_plane, s_tile):
    """Returns:
      coords_all: (n_src, B, T, 3) f32 border-clamped texel coordinates
      cell_all:   (3, S_total)     int32 per-axis flat-cell indices (-1 = pad)
      feat_all:   (B, C, S_total)  bf16 concatenated native-flatten feature slab
      src_map:    (n_S_tiles,)     int32 S-tile -> source index (scalar prefetch)
    """
    order = []
    if "grid" in c_plane:
        order.append("grid")
    for k in ("xz", "xy", "yz"):
        if k in c_plane:
            order.append(k)
    assert order, "PatchLocalDecoder c_dim != 0 path needs feature planes"

    coords_list, cell_cols, feat_cols, src_map = [], [], [], []
    for s_idx, key in enumerate(order):
        fmap = c_plane[key]
        if key == "grid":
            bb, cc, d_, h_, w_ = fmap.shape
            sizes3 = (w_, h_, d_)                       # coordinate-column order (x,y,z)
            feat = fmap.reshape(bb, cc, d_ * h_ * w_)   # native NCDHW flatten
        else:
            bb, cc, h_, w_ = fmap.shape
            sizes3 = (w_, h_, 1)                        # dummy 3rd axis, size 1
            feat = fmap.reshape(bb, cc, h_ * w_)        # native NCHW flatten
        pn = p_n[key].astype(jnp.float32)               # (B, T, ndim)

        # scaled + border-clamped texel coords (grid_sample, align_corners=True,
        # padding_mode='border' after vgrid = 2*xy - 1).  Tiny per-source array;
        # precomputed here because the scale is source-dependent while the
        # source is a dynamic grid index in the kernel.
        cols = []
        for a in range(3):
            size = sizes3[a]
            if a < pn.shape[-1]:
                cols.append(jnp.clip(pn[..., a] * float(size - 1),
                                     0.0, float(size - 1)))
            else:
                cols.append(jnp.zeros(pn.shape[:-1], jnp.float32))
        coords_list.append(jnp.stack(cols, axis=-1))    # (B, T, 3)

        # per-axis flat-cell index rows (host numpy -> no int // or % in-kernel)
        s_src = int(np.prod(sizes3))
        s_pad = -(-s_src // s_tile) * s_tile
        flat = np.arange(s_src, dtype=np.int64)
        rows = np.full((3, s_pad), -1, dtype=np.int32)
        stride = 1
        for a in range(3):
            rows[a, :s_src] = ((flat // stride) % sizes3[a]).astype(np.int32)
            stride *= sizes3[a]
        cell_cols.append(rows)

        feat_cols.append(jnp.pad(feat, ((0, 0), (0, 0), (0, s_pad - s_src))))
        src_map.extend([s_idx] * (s_pad // s_tile))

    coords_all = jnp.stack(coords_list, axis=0)                       # (n_src,B,T,3)
    cell_all = jnp.asarray(np.concatenate(cell_cols, axis=1))         # (3, S_total)
    feat_all = jnp.concatenate(feat_cols, axis=-1).astype(jnp.bfloat16)
    src_map = jnp.asarray(np.asarray(src_map, dtype=np.int32))
    return coords_all, cell_all, feat_all, src_map


# ============================================================================
# Wrapper: BlockSpecs / grid / pallas_call.
# ============================================================================
def patch_local_decoder_forward(p_dict, c_plane, params,
                                *, s_tile=S_TILE, s_chunk=S_CHUNK, t_tile=None):
    p = p_dict["p"].astype(jnp.float32)                 # (B, T, DIM)
    b, t, dim = p.shape
    if t_tile is None:
        t_tile = t
    assert t % t_tile == 0 and t_tile % 8 == 0
    assert s_tile % 128 == 0 and s_tile % s_chunk == 0

    coords_all, cell_all, feat_all, src_map = _prep_sources(
        p_dict["p_n"], c_plane, s_tile)
    c_dim = feat_all.shape[1]
    n_stiles = feat_all.shape[-1] // s_tile

    n_blocks, _, hidden = params["fc0_w"].shape
    # fc_out padded to 128 lanes -> lane-dense final matmul + unmasked store.
    fco_w = jnp.zeros((hidden, OUT_PAD), jnp.float32).at[:, :1].set(params["fc_out_w"])
    fco_b = jnp.zeros((1, OUT_PAD), jnp.float32).at[:, :1].set(params["fc_out_b"])

    # resident weights: constant index maps -> DMA'd once, stay in VMEM
    const = lambda nd: (lambda bb, ti, st, sm: (0,) * nd)
    weight_specs = [
        pl.BlockSpec(params["fc_p_w"].shape, const(2)),
        pl.BlockSpec(params["fc_p_b"].shape, const(2)),
        pl.BlockSpec(params["fc_c_w"].shape, const(3)),   # (n_blocks, C, H) per-block
        pl.BlockSpec(params["fc_c_b"].shape, const(2)),
        pl.BlockSpec(params["fc0_w"].shape, const(3)),
        pl.BlockSpec(params["fc0_b"].shape, const(2)),
        pl.BlockSpec(params["fc1_w"].shape, const(3)),
        pl.BlockSpec(params["fc1_b"].shape, const(2)),
        pl.BlockSpec(fco_w.shape, const(2)),
        pl.BlockSpec(fco_b.shape, const(2)),
    ]

    grid_spec = pltpu.PrefetchScalarGridSpec(
        num_scalar_prefetch=1,                  # src_map: S tile -> source index
        grid=(b, t // t_tile, n_stiles),        # (parallel, parallel, arbitrary)
        in_specs=[
            # coords of the source owning this S tile
            pl.BlockSpec((None, None, t_tile, 3),
                         lambda bb, ti, st, sm: (sm[st], bb, ti, 0)),
            # per-axis flat-cell index rows for this S tile
            pl.BlockSpec((3, s_tile), lambda bb, ti, st, sm: (0, st)),
            # bf16 feature tile (the big DMA) - double buffered
            pl.BlockSpec((None, c_dim, s_tile),
                         lambda bb, ti, st, sm: (bb, 0, st),
                         pipeline_mode=pl.Buffered(2)),
            # query points for the MLP
            pl.BlockSpec((None, t_tile, dim), lambda bb, ti, st, sm: (bb, ti, 0)),
        ] + weight_specs,
        out_specs=pl.BlockSpec((None, t_tile, OUT_PAD),
                               lambda bb, ti, st, sm: (bb, ti, 0)),
        scratch_shapes=[pltpu.VMEM((t_tile, c_dim), jnp.float32)],   # resident c accum
    )

    out = pl.pallas_call(
        _make_kernel(n_blocks, s_chunk),
        out_shape=jax.ShapeDtypeStruct((b, t, OUT_PAD), jnp.float32),
        grid_spec=grid_spec,
        compiler_params=pltpu.CompilerParams(
            # parallel B/T axes shard across the 2 TCs on v7x; S is the reduction
            dimension_semantics=("parallel", "parallel", "arbitrary"),
            # sized so the same tiles also fit v7x's 64 MiB physical VMEM;
            # raise toward 100 MiB on v5e/v6e for bigger production tiles.
            vmem_limit_bytes=32 * 1024 * 1024),
    )(src_map, coords_all, cell_all, feat_all, p,
      params["fc_p_w"], params["fc_p_b"],
      params["fc_c_w"], params["fc_c_b"],
      params["fc0_w"], params["fc0_b"],
      params["fc1_w"], params["fc1_b"],
      fco_w, fco_b)

    # TODO(synk): map2local / sin_cos positional-encoding branches are not
    # exercised (module defaults: local_coord=False, pos_encoding='linear').
    return out[:, :, 0]                                  # (B, T)


# ============================================================================
# Pure-JAX reference (gather-based grid_sample + jnp MLP) for verification.
# ============================================================================
def _flatten_plane_2d(plane_nchw):
    b, c, h, w = plane_nchw.shape
    return jnp.transpose(plane_nchw, (0, 2, 3, 1)).reshape(b, h * w, c), (w, h)


def _flatten_grid_3d(grid_ncdhw):
    b, c, d, h, w = grid_ncdhw.shape
    return (jnp.transpose(grid_ncdhw, (0, 2, 3, 4, 1)).reshape(b, d * h * w, c),
            (w, h, d))


def _ref_sample(pn, feat_flat, spatial_sizes, quantize_bf16):
    strides = []
    s = 1
    for sz in spatial_sizes:
        strides.append(s)
        s *= sz
    i0s, i1s, ws = [], [], []
    for a, size in enumerate(spatial_sizes):
        coord = jnp.clip(pn[..., a] * float(size - 1), 0.0, float(size - 1))
        f0 = jnp.floor(coord)
        i0 = f0.astype(jnp.int32)
        i1 = jnp.minimum(i0 + 1, size - 1)
        i0s.append(i0)
        i1s.append(i1)
        ws.append(coord - f0)
    out = 0.0
    for corner in range(1 << len(spatial_sizes)):
        idx = 0
        w = 1.0
        for a in range(len(spatial_sizes)):
            if (corner >> a) & 1:
                idx = idx + i1s[a] * strides[a]
                w = w * ws[a]
            else:
                idx = idx + i0s[a] * strides[a]
                w = w * (1.0 - ws[a])
        if quantize_bf16:
            w = w.astype(jnp.bfloat16).astype(jnp.float32)
        g = jnp.take_along_axis(feat_flat, idx[:, :, None], axis=1)
        out = out + w[..., None] * g
    return out


def _ref_forward(p_dict, c_plane, params, quantize_feat=False):
    p = p_dict["p"].astype(jnp.float32)
    p_n = p_dict["p_n"]
    b, tq, _ = p.shape
    relu = lambda x: jnp.maximum(x, 0.0)
    q = ((lambda x: x.astype(jnp.bfloat16).astype(jnp.float32))
         if quantize_feat else (lambda x: x))

    c = jnp.zeros((b, tq, C_DIM), jnp.float32)
    if "grid" in c_plane:
        feat, sizes = _flatten_grid_3d(q(c_plane["grid"]))
        c = c + _ref_sample(p_n["grid"].astype(jnp.float32), feat, sizes, quantize_feat)
    for key in ("xz", "xy", "yz"):
        if key in c_plane:
            feat, sizes = _flatten_plane_2d(q(c_plane[key]))
            c = c + _ref_sample(p_n[key].astype(jnp.float32), feat, sizes, quantize_feat)

    net = p @ params["fc_p_w"] + params["fc_p_b"]
    for i in range(N_BLOCKS):
        net = net + c @ params["fc_c_w"][i] + params["fc_c_b"][i]
        h = relu(net) @ params["fc0_w"][i] + params["fc0_b"][i]
        dx = relu(h) @ params["fc1_w"][i] + params["fc1_b"][i]
        net = net + dx
    out = relu(net) @ params["fc_out_w"] + params["fc_out_b"]
    return out[..., 0]


# ============================================================================
# Deterministic parameter / input construction.
# ============================================================================
def init_params(key):
    ks = jax.random.split(key, 10)

    def lin(k, fan_in, shape):
        return jax.random.normal(k, shape, jnp.float32) / jnp.sqrt(float(fan_in))

    return {
        "fc_p_w": lin(ks[0], DIM, (DIM, HIDDEN)),
        "fc_p_b": lin(ks[1], DIM, (1, HIDDEN)),
        "fc_c_w": lin(ks[2], C_DIM, (N_BLOCKS, C_DIM, HIDDEN)),
        "fc_c_b": lin(ks[3], C_DIM, (N_BLOCKS, HIDDEN)),
        "fc0_w": lin(ks[4], HIDDEN, (N_BLOCKS, HIDDEN, HIDDEN)),
        "fc0_b": lin(ks[5], HIDDEN, (N_BLOCKS, HIDDEN)),
        "fc1_w": lin(ks[6], HIDDEN, (N_BLOCKS, HIDDEN, HIDDEN)),
        "fc1_b": lin(ks[7], HIDDEN, (N_BLOCKS, HIDDEN)),
        "fc_out_w": lin(ks[8], HIDDEN, (HIDDEN, 1)),
        "fc_out_b": lin(ks[9], HIDDEN, (1, 1)),
    }


if __name__ == "__main__":
    key = jax.random.PRNGKey(0)
    (k_par, k_p, k_xz, k_xy, k_yz, k_g,
     k_cxz, k_cxy, k_cyz, k_cg) = jax.random.split(key, 10)

    params = init_params(k_par)

    p_dict = {
        "p": jax.random.uniform(k_p, (B, T, DIM), jnp.float32, -0.55, 0.55),
        "p_n": {
            "xz": jax.random.uniform(k_xz, (B, T, 2), jnp.float32),
            "xy": jax.random.uniform(k_xy, (B, T, 2), jnp.float32),
            "yz": jax.random.uniform(k_yz, (B, T, 2), jnp.float32),
            "grid": jax.random.uniform(k_g, (B, T, 3), jnp.float32),
        },
    }
    c_plane = {
        "xz": jax.random.normal(k_cxz, (B, C_DIM, PLANE_RES, PLANE_RES), jnp.float32),
        "xy": jax.random.normal(k_cxy, (B, C_DIM, PLANE_RES, PLANE_RES), jnp.float32),
        "yz": jax.random.normal(k_cyz, (B, C_DIM, PLANE_RES, PLANE_RES), jnp.float32),
        "grid": jax.random.normal(k_cg, (B, C_DIM, GRID_RES, GRID_RES, GRID_RES),
                                  jnp.float32),
    }

    out = jax.block_until_ready(patch_local_decoder_forward(p_dict, c_plane, params))
    assert out.shape == (B, T)

    # The kernel stores the conditioning-feature slab in bfloat16 and runs the
    # sampling contraction on the MXU bf16 path (per perf review).  Validate
    # against a reference that applies exactly that quantization (features and
    # interpolation weights rounded to bf16, f32 accumulation), so the check
    # verifies the sampling + accumulation + MLP algorithm rather than the
    # documented bf16 storage rounding (~1e-3 relative vs. the pure-f32 module).
    # TODO(synk): for bit-parity with the f32 torch module, keep the slab in f32
    # and use precision=HIGHEST on the mask contraction.
    ref = jax.block_until_ready(_ref_forward(p_dict, c_plane, params,
                                             quantize_feat=True))
    np.testing.assert_allclose(np.asarray(out), np.asarray(ref),
                               rtol=1e-3, atol=1e-3)

    print("KERNEL_OK")
</pallas_src>

<mosaic_0001>
module attributes {stable_mosaic.version = 11 : i64} {
  func.func @kernel(%arg0: i32, %arg1: i32, %arg2: i32, %arg3: memref<5xi32, #tpu.memory_space<smem>>, %arg4: memref<1x1x8x3xf32, #tpu.memory_space<vmem>>, %arg5: memref<3x256xi32, #tpu.memory_space<vmem>>, %arg6: memref<1x8x256xbf16, #tpu.memory_space<vmem>>, %arg7: memref<1x8x3xf32, #tpu.memory_space<vmem>>, %arg8: memref<3x32xf32, #tpu.memory_space<vmem>>, %arg9: memref<1x32xf32, #tpu.memory_space<vmem>>, %arg10: memref<5x8x32xf32, #tpu.memory_space<vmem>>, %arg11: memref<5x32xf32, #tpu.memory_space<vmem>>, %arg12: memref<5x32x32xf32, #tpu.memory_space<vmem>>, %arg13: memref<5x32xf32, #tpu.memory_space<vmem>>, %arg14: memref<5x32x32xf32, #tpu.memory_space<vmem>>, %arg15: memref<5x32xf32, #tpu.memory_space<vmem>>, %arg16: memref<32x128xf32, #tpu.memory_space<vmem>>, %arg17: memref<1x128xf32, #tpu.memory_space<vmem>>, %arg18: memref<1x8x128xf32, #tpu.memory_space<vmem>>, %arg19: memref<8x8xf32, #tpu.memory_space<vmem>>) attributes {dimension_semantics = [#tpu.dimension_semantics<parallel>, #tpu.dimension_semantics<parallel>, #tpu.dimension_semantics<arbitrary>], iteration_bounds = array<i64: 2, 1, 5>, scalar_prefetch = 1 : i64, scratch_operands = 1 : i64, tpu.core_type = #tpu.core_type<tc>, window_params = [{transform_indices = @transform_0, window_bounds = array<i64: 1, 1, 8, 3>}, {transform_indices = @transform_1, window_bounds = array<i64: 3, 256>}, {pipeline_mode = #tpu.pipeline_mode<double_buffered>, transform_indices = @transform_2, window_bounds = array<i64: 1, 8, 256>}, {transform_indices = @transform_3, window_bounds = array<i64: 1, 8, 3>}, {pipeline_mode = #tpu.pipeline_mode<synchronous>, transform_indices = @transform_4, window_bounds = array<i64: 3, 32>}, {pipeline_mode = #tpu.pipeline_mode<synchronous>, transform_indices = @transform_5, window_bounds = array<i64: 1, 32>}, {pipeline_mode = #tpu.pipeline_mode<synchronous>, transform_indices = @transform_6, window_bounds = array<i64: 5, 8, 32>}, {pipeline_mode = #tpu.pipeline_mode<synchronous>, transform_indices = @transform_7, window_bounds = array<i64: 5, 32>}, {pipeline_mode = #tpu.pipeline_mode<synchronous>, transform_indices = @transform_8, window_bounds = array<i64: 5, 32, 32>}, {pipeline_mode = #tpu.pipeline_mode<synchronous>, transform_indices = @transform_9, window_bounds = array<i64: 5, 32>}, {pipeline_mode = #tpu.pipeline_mode<synchronous>, transform_indices = @transform_10, window_bounds = array<i64: 5, 32, 32>}, {pipeline_mode = #tpu.pipeline_mode<synchronous>, transform_indices = @transform_11, window_bounds = array<i64: 5, 32>}, {pipeline_mode = #tpu.pipeline_mode<synchronous>, transform_indices = @transform_12, window_bounds = array<i64: 32, 128>}, {pipeline_mode = #tpu.pipeline_mode<synchronous>, transform_indices = @transform_13, window_bounds = array<i64: 1, 128>}, {transform_indices = @transform_14, window_bounds = array<i64: 1, 8, 128>}]} {
    %c0_i32 = arith.constant 0 : i32
    %0 = arith.cmpi eq, %arg2, %c0_i32 : i32
    %1 = arith.extui %0 : i1 to i32
    %c0_i32_0 = arith.constant 0 : i32
    %2 = arith.cmpi ne, %1, %c0_i32_0 : i32
    scf.if %2 {
      %cst_22 = arith.constant 0.000000e+00 : f32
      %81 = vector.broadcast %cst_22 : f32 to vector<8x8xf32>
      %c0_23 = arith.constant 0 : index
      %c0_24 = arith.constant 0 : index
      %82 = vector.load %arg19[%c0_23, %c0_24] : memref<8x8xf32, #tpu.memory_space<vmem>>, vector<8x8xf32>
      tpu.vector_store %arg19[%c0_23, %c0_24], %81 {strides = array<i32>} : memref<8x8xf32, #tpu.memory_space<vmem>>, vector<8x8xf32>,
    } else {
    }
    %c0 = arith.constant 0 : index
    %c0_1 = arith.constant 0 : index
    %c0_2 = arith.constant 0 : index
    %c0_3 = arith.constant 0 : index
    %3 = vector.load %arg4[%c0, %c0_1, %c0_2, %c0_3] : memref<1x1x8x3xf32, #tpu.memory_space<vmem>>, vector<1x1x8x3xf32>
    %4 = vector.shape_cast %3 : vector<1x1x8x3xf32> to vector<8x3xf32>
    %5 = math.floor %4 : vector<8x3xf32>
    %6 = arith.subf %4, %5 : vector<8x3xf32>
    %7 = arith.fptosi %5 : vector<8x3xf32> to vector<8x3xi32>
    %c0_4 = arith.constant 0 : index
    %c0_5 = arith.constant 0 : index
    %8 = vector.load %arg5[%c0_4, %c0_5] : memref<3x256xi32, #tpu.memory_space<vmem>>, vector<3x256xi32>
    %9 = vector.extract_strided_slice %8 {offsets = [0, 0], sizes = [1, 256], strides = [1, 1]} : vector<3x256xi32> to vector<1x256xi32>
    %10 = vector.extract_strided_slice %7 {offsets = [0, 0], sizes = [8, 1], strides = [1, 1]} : vector<8x3xi32> to vector<8x1xi32>
    %11 = vector.extract_strided_slice %6 {offsets = [0, 0], sizes = [8, 1], strides = [1, 1]} : vector<8x3xf32> to vector<8x1xf32>
    %12 = vector.broadcast %9 : vector<1x256xi32> to vector<8x256xi32>
    %13 = vector.broadcast %10 : vector<8x1xi32> to vector<8x256xi32>
    %14 = arith.cmpi eq, %12, %13 : vector<8x256xi32>
    %cst = arith.constant 1.000000e+00 : f32
    %15 = vector.broadcast %cst : f32 to vector<8x1xf32>
    %16 = arith.subf %15, %11 : vector<8x1xf32>
    %c1_i32 = arith.constant 1 : i32
    %17 = vector.broadcast %c1_i32 : i32 to vector<8x1xi32>
    %18 = arith.addi %10, %17 : vector<8x1xi32>
    %19 = vector.broadcast %9 : vector<1x256xi32> to vector<8x256xi32>
    %20 = vector.broadcast %18 : vector<8x1xi32> to vector<8x256xi32>
    %21 = arith.cmpi eq, %19, %20 : vector<8x256xi32>
    %cst_6 = arith.constant 0.000000e+00 : f32
    %22 = vector.shape_cast %11 : vector<8x1xf32> to vector<8x1xf32>
    %23 = vector.broadcast %22 : vector<8x1xf32> to vector<8x256xf32>
    %24 = vector.broadcast %cst_6 : f32 to vector<8x256xf32>
    %25 = arith.select %21, %23, %24 : vector<8x256xi1>, vector<8x256xf32>
    %26 = vector.shape_cast %16 : vector<8x1xf32> to vector<8x1xf32>
    %27 = vector.broadcast %26 : vector<8x1xf32> to vector<8x256xf32>
    %28 = arith.select %14, %27, %25 : vector<8x256xi1>, vector<8x256xf32>
    %29 = vector.extract_strided_slice %8 {offsets = [1, 0], sizes = [1, 256], strides = [1, 1]} : vector<3x256xi32> to vector<1x256xi32>
    %30 = vector.extract_strided_slice %7 {offsets = [0, 1], sizes = [8, 1], strides = [1, 1]} : vector<8x3xi32> to vector<8x1xi32>
    %31 = vector.extract_strided_slice %6 {offsets = [0, 1], sizes = [8, 1], strides = [1, 1]} : vector<8x3xf32> to vector<8x1xf32>
    %32 = vector.broadcast %29 : vector<1x256xi32> to vector<8x256xi32>
    %33 = vector.broadcast %30 : vector<8x1xi32> to vector<8x256xi32>
    %34 = arith.cmpi eq, %32, %33 : vector<8x256xi32>
    %cst_7 = arith.constant 1.000000e+00 : f32
    %35 = vector.broadcast %cst_7 : f32 to vector<8x1xf32>
    %36 = arith.subf %35, %31 : vector<8x1xf32>
    %c1_i32_8 = arith.constant 1 : i32
    %37 = vector.broadcast %c1_i32_8 : i32 to vector<8x1xi32>
    %38 = arith.addi %30, %37 : vector<8x1xi32>
    %39 = vector.broadcast %29 : vector<1x256xi32> to vector<8x256xi32>
    %40 = vector.broadcast %38 : vector<8x1xi32> to vector<8x256xi32>
    %41 = arith.cmpi eq, %39, %40 : vector<8x256xi32>
    %cst_9 = arith.constant 0.000000e+00 : f32
    %42 = vector.shape_cast %31 : vector<8x1xf32> to vector<8x1xf32>
    %43 = vector.broadcast %42 : vector<8x1xf32> to vector<8x256xf32>
    %44 = vector.broadcast %cst_9 : f32 to vector<8x256xf32>
    %45 = arith.select %41, %43, %44 : vector<8x256xi1>, vector<8x256xf32>
    %46 = vector.shape_cast %36 : vector<8x1xf32> to vector<8x1xf32>
    %47 = vector.broadcast %46 : vector<8x1xf32> to vector<8x256xf32>
    %48 = arith.select %34, %47, %45 : vector<8x256xi1>, vector<8x256xf32>
    %49 = arith.mulf %28, %48 : vector<8x256xf32>
    %50 = vector.extract_strided_slice %8 {offsets = [2, 0], sizes = [1, 256], strides = [1, 1]} : vector<3x256xi32> to vector<1x256xi32>
    %51 = vector.extract_strided_slice %7 {offsets = [0, 2], sizes = [8, 1], strides = [1, 1]} : vector<8x3xi32> to vector<8x1xi32>
    %52 = vector.extract_strided_slice %6 {offsets = [0, 2], sizes = [8, 1], strides = [1, 1]} : vector<8x3xf32> to vector<8x1xf32>
    %53 = vector.broadcast %50 : vector<1x256xi32> to vector<8x256xi32>
    %54 = vector.broadcast %51 : vector<8x1xi32> to vector<8x256xi32>
    %55 = arith.cmpi eq, %53, %54 : vector<8x256xi32>
    %cst_10 = arith.constant 1.000000e+00 : f32
    %56 = vector.broadcast %cst_10 : f32 to vector<8x1xf32>
    %57 = arith.subf %56, %52 : vector<8x1xf32>
    %c1_i32_11 = arith.constant 1 : i32
    %58 = vector.broadcast %c1_i32_11 : i32 to vector<8x1xi32>
    %59 = arith.addi %51, %58 : vector<8x1xi32>
    %60 = vector.broadcast %50 : vector<1x256xi32> to vector<8x256xi32>
    %61 = vector.broadcast %59 : vector<8x1xi32> to vector<8x256xi32>
    %62 = arith.cmpi eq, %60, %61 : vector<8x256xi32>
    %cst_12 = arith.constant 0.000000e+00 : f32
    %63 = vector.shape_cast %52 : vector<8x1xf32> to vector<8x1xf32>
    %64 = vector.broadcast %63 : vector<8x1xf32> to vector<8x256xf32>
    %65 = vector.broadcast %cst_12 : f32 to vector<8x256xf32>
    %66 = arith.select %62, %64, %65 : vector<8x256xi1>, vector<8x256xf32>
    %67 = vector.shape_cast %57 : vector<8x1xf32> to vector<8x1xf32>
    %68 = vector.broadcast %67 : vector<8x1xf32> to vector<8x256xf32>
    %69 = arith.select %55, %68, %66 : vector<8x256xi1>, vector<8x256xf32>
    %70 = arith.mulf %49, %69 : vector<8x256xf32>
    %c0_13 = arith.constant 0 : index
    %c0_14 = arith.constant 0 : index
    %71 = vector.load %arg19[%c0_13, %c0_14] : memref<8x8xf32, #tpu.memory_space<vmem>>, vector<8x8xf32>
    %72 = arith.truncf %70 : vector<8x256xf32> to vector<8x256xbf16>
    %c0_15 = arith.constant 0 : index
    %c0_16 = arith.constant 0 : index
    %c0_17 = arith.constant 0 : index
    %73 = vector.load %arg6[%c0_15, %c0_16, %c0_17] : memref<1x8x256xbf16, #tpu.memory_space<vmem>>, vector<1x8x256xbf16>
    %74 = vector.shape_cast %73 : vector<1x8x256xbf16> to vector<8x256xbf16>
    %cst_18 = arith.constant dense<0.000000e+00> : vector<8x8xf32>
    %75 = tpu.matmul %72, %74, %cst_18 {dimension_numbers = #tpu.dot_dimension_numbers<[1], [1], [0], [0], [0, 0, 1, 0], [], []>} : vector<8x256xbf16>, vector<8x256xbf16>, vector<8x8xf32> -> vector<8x8xf32>
    %76 = arith.addf %71, %75 : vector<8x8xf32>
    %c0_19 = arith.constant 0 : index
    %c0_20 = arith.constant 0 : index
    %77 = vector.load %arg19[%c0_19, %c0_20] : memref<8x8xf32, #tpu.memory_space<vmem>>, vector<8x8xf32>
    tpu.vector_store %arg19[%c0_19, %c0_20], %76 {strides = array<i32>} : memref<8x8xf32, #tpu.memory_space<vmem>>, vector<8x8xf32>,
    %c4_i32 = arith.constant 4 : i32
    %78 = arith.cmpi eq, %arg2, %c4_i32 : i32
    %79 = arith.extui %78 : i1 to i32
    %c0_i32_21 = arith.constant 0 : i32
    %80 = arith.cmpi ne, %79, %c0_i32_21 : i32
    scf.if %80 {
      %c0_22 = arith.constant 0 : index
      %c0_23 = arith.constant 0 : index
      %81 = vector.load %arg19[%c0_22, %c0_23] : memref<8x8xf32, #tpu.memory_space<vmem>>, vector<8x8xf32>
      %c0_24 = arith.constant 0 : index
      %c0_25 = arith.constant 0 : index
      %c0_26 = arith.constant 0 : index
      %82 = vector.load %arg7[%c0_24, %c0_25, %c0_26] : memref<1x8x3xf32, #tpu.memory_space<vmem>>, vector<1x8x3xf32>
      %83 = vector.shape_cast %82 : vector<1x8x3xf32> to vector<8x3xf32>
      %c0_27 = arith.constant 0 : index
      %c0_28 = arith.constant 0 : index
      %84 = vector.load %arg8[%c0_27, %c0_28] : memref<3x32xf32, #tpu.memory_space<vmem>>, vector<3x32xf32>
      %cst_29 = arith.constant dense<0.000000e+00> : vector<8x32xf32>
      %85 = tpu.matmul %83, %84, %cst_29 {dimension_numbers = #tpu.dot_dimension_numbers<[1], [0], [0], [1], [0, 0, 1, 1], [], []>} : vector<8x3xf32>, vector<3x32xf32>, vector<8x32xf32> -> vector<8x32xf32>
      %c0_30 = arith.constant 0 : index
      %c0_31 = arith.constant 0 : index
      %86 = vector.load %arg9[%c0_30, %c0_31] : memref<1x32xf32, #tpu.memory_space<vmem>>, vector<1x32xf32>
      %87 = vector.broadcast %86 : vector<1x32xf32> to vector<8x32xf32>
      %88 = arith.addf %85, %87 : vector<8x32xf32>
      %c0_32 = arith.constant 0 : index
      %c0_33 = arith.constant 0 : index
      %c0_34 = arith.constant 0 : index
      %89 = vector.load %arg10[%c0_32, %c0_33, %c0_34] : memref<5x8x32xf32, #tpu.memory_space<vmem>>, vector<1x8x32xf32>
      %90 = vector.shape_cast %89 : vector<1x8x32xf32> to vector<8x32xf32>
      %cst_35 = arith.constant dense<0.000000e+00> : vector<8x32xf32>
      %91 = tpu.matmul %81, %90, %cst_35 {dimension_numbers = #tpu.dot_dimension_numbers<[1], [0], [0], [1], [0, 0, 1, 1], [], []>} : vector<8x8xf32>, vector<8x32xf32>, vector<8x32xf32> -> vector<8x32xf32>
      %c0_36 = arith.constant 0 : index
      %c0_37 = arith.constant 0 : index
      %92 = vector.load %arg11[%c0_36, %c0_37] : memref<5x32xf32, #tpu.memory_space<vmem>>, vector<1x32xf32>
      %93 = vector.broadcast %92 : vector<1x32xf32> to vector<8x32xf32>
      %94 = arith.addf %91, %93 : vector<8x32xf32>
      %95 = arith.addf %88, %94 : vector<8x32xf32>
      %cst_38 = arith.constant 0.000000e+00 : f32
      %96 = vector.broadcast %cst_38 : f32 to vector<8x32xf32>
      %97 = arith.maximumf %95, %96 : vector<8x32xf32>
      %c0_39 = arith.constant 0 : index
      %c0_40 = arith.constant 0 : index
      %c0_41 = arith.constant 0 : index
      %98 = vector.load %arg12[%c0_39, %c0_40, %c0_41] : memref<5x32x32xf32, #tpu.memory_space<vmem>>, vector<1x32x32xf32>
      %99 = vector.shape_cast %98 : vector<1x32x32xf32> to vector<32x32xf32>
      %cst_42 = arith.constant dense<0.000000e+00> : vector<8x32xf32>
      %100 = tpu.matmul %97, %99, %cst_42 {dimension_numbers = #tpu.dot_dimension_numbers<[1], [0], [0], [1], [0, 0, 1, 1], [], []>} : vector<8x32xf32>, vector<32x32xf32>, vector<8x32xf32> -> vector<8x32xf32>
      %c0_43 = arith.constant 0 : index
      %c0_44 = arith.constant 0 : index
      %101 = vector.load %arg13[%c0_43, %c0_44] : memref<5x32xf32, #tpu.memory_space<vmem>>, vector<1x32xf32>
      %102 = vector.broadcast %101 : vector<1x32xf32> to vector<8x32xf32>
      %103 = arith.addf %100, %102 : vector<8x32xf32>
      %cst_45 = arith.constant 0.000000e+00 : f32
      %104 = vector.broadcast %cst_45 : f32 to vector<8x32xf32>
      %105 = arith.maximumf %103, %104 : vector<8x32xf32>
      %c0_46 = arith.constant 0 : index
      %c0_47 = arith.constant 0 : index
      %c0_48 = arith.constant 0 : index
      %106 = vector.load %arg14[%c0_46, %c0_47, %c0_48] : memref<5x32x32xf32, #tpu.memory_space<vmem>>, vector<1x32x32xf32>
      %107 = vector.shape_cast %106 : vector<1x32x32xf32> to vector<32x32xf32>
      %cst_49 = arith.constant dense<0.000000e+00> : vector<8x32xf32>
      %108 = tpu.matmul %105, %107, %cst_49 {dimension_numbers = #tpu.dot_dimension_numbers<[1], [0], [0], [1], [0, 0, 1, 1], [], []>} : vector<8x32xf32>, vector<32x32xf32>, vector<8x32xf32> -> vector<8x32xf32>
      %c0_50 = arith.constant 0 : index
      %c0_51 = arith.constant 0 : index
      %109 = vector.load %arg15[%c0_50, %c0_51] : memref<5x32xf32, #tpu.memory_space<vmem>>, vector<1x32xf32>
      %110 = vector.broadcast %109 : vector<1x32xf32> to vector<8x32xf32>
      %111 = arith.addf %108, %110 : vector<8x32xf32>
      %112 = arith.addf %95, %111 : vector<8x32xf32>
      %c1 = arith.constant 1 : index
      %c0_52 = arith.constant 0 : index
      %c0_53 = arith.constant 0 : index
      %113 = vector.load %arg10[%c1, %c0_52, %c0_53] : memref<5x8x32xf32, #tpu.memory_space<vmem>>, vector<1x8x32xf32>
      %114 = vector.shape_cast %113 : vector<1x8x32xf32> to vector<8x32xf32>
      %cst_54 = arith.constant dense<0.000000e+00> : vector<8x32xf32>
      %115 = tpu.matmul %81, %114, %cst_54 {dimension_numbers = #tpu.dot_dimension_numbers<[1], [0], [0], [1], [0, 0, 1, 1], [], []>} : vector<8x8xf32>, vector<8x32xf32>, vector<8x32xf32> -> vector<8x32xf32>
      %c1_55 = arith.constant 1 : index
      %c0_56 = arith.constant 0 : index
      %116 = vector.load %arg11[%c1_55, %c0_56] : memref<5x32xf32, #tpu.memory_space<vmem>>, vector<1x32xf32>
      %117 = vector.broadcast %116 : vector<1x32xf32> to vector<8x32xf32>
      %118 = arith.addf %115, %117 : vector<8x32xf32>
      %119 = arith.addf %112, %118 : vector<8x32xf32>
      %cst_57 = arith.constant 0.000000e+00 : f32
      %120 = vector.broadcast %cst_57 : f32 to vector<8x32xf32>
      %121 = arith.maximumf %119, %120 : vector<8x32xf32>
      %c1_58 = arith.constant 1 : index
      %c0_59 = arith.constant 0 : index
      %c0_60 = arith.constant 0 : index
      %122 = vector.load %arg12[%c1_58, %c0_59, %c0_60] : memref<5x32x32xf32, #tpu.memory_space<vmem>>, vector<1x32x32xf32>
      %123 = vector.shape_cast %122 : vector<1x32x32xf32> to vector<32x32xf32>
      %cst_61 = arith.constant dense<0.000000e+00> : vector<8x32xf32>
      %124 = tpu.matmul %121, %123, %cst_61 {dimension_numbers = #tpu.dot_dimension_numbers<[1], [0], [0], [1], [0, 0, 1, 1], [], []>} : vector<8x32xf32>, vector<32x32xf32>, vector<8x32xf32> -> vector<8x32xf32>
      %c1_62 = arith.constant 1 : index
      %c0_63 = arith.constant 0 : index
      %125 = vector.load %arg13[%c1_62, %c0_63] : memref<5x32xf32, #tpu.memory_space<vmem>>, vector<1x32xf32>
      %126 = vector.broadcast %125 : vector<1x32xf32> to vector<8x32xf32>
      %127 = arith.addf %124, %126 : vector<8x32xf32>
      %cst_64 = arith.constant 0.000000e+00 : f32
      %128 = vector.broadcast %cst_64 : f32 to vector<8x32xf32>
      %129 = arith.maximumf %127, %128 : vector<8x32xf32>
      %c1_65 = arith.constant 1 : index
      %c0_66 = arith.constant 0 : index
      %c0_67 = arith.constant 0 : index
      %130 = vector.load %arg14[%c1_65, %c0_66, %c0_67] : memref<5x32x32xf32, #tpu.memory_space<vmem>>, vector<1x32x32xf32>
      %131 = vector.shape_cast %130 : vector<1x32x32xf32> to vector<32x32xf32>
      %cst_68 = arith.constant dense<0.000000e+00> : vector<8x32xf32>
      %132 = tpu.matmul %129, %131, %cst_68 {dimension_numbers = #tpu.dot_dimension_numbers<[1], [0], [0], [1], [0, 0, 1, 1], [], []>} : vector<8x32xf32>, vector<32x32xf32>, vector<8x32xf32> -> vector<8x32xf32>
      %c1_69 = arith.constant 1 : index
      %c0_70 = arith.constant 0 : index
      %133 = vector.load %arg15[%c1_69, %c0_70] : memref<5x32xf32, #tpu.memory_space<vmem>>, vector<1x32xf32>
      %134 = vector.broadcast %133 : vector<1x32xf32> to vector<8x32xf32>
      %135 = arith.addf %132, %134 : vector<8x32xf32>
      %136 = arith.addf %119, %135 : vector<8x32xf32>
      %c2 = arith.constant 2 : index
      %c0_71 = arith.constant 0 : index
      %c0_72 = arith.constant 0 : index
      %137 = vector.load %arg10[%c2, %c0_71, %c0_72] : memref<5x8x32xf32, #tpu.memory_space<vmem>>, vector<1x8x32xf32>
      %138 = vector.shape_cast %137 : vector<1x8x32xf32> to vector<8x32xf32>
      %cst_73 = arith.constant dense<0.000000e+00> : vector<8x32xf32>
      %139 = tpu.matmul %81, %138, %cst_73 {dimension_numbers = #tpu.dot_dimension_numbers<[1], [0], [0], [1], [0, 0, 1, 1], [], []>} : vector<8x8xf32>, vector<8x32xf32>, vector<8x32xf32> -> vector<8x32xf32>
      %c2_74 = arith.constant 2 : index
      %c0_75 = arith.constant 0 : index
      %140 = vector.load %arg11[%c2_74, %c0_75] : memref<5x32xf32, #tpu.memory_space<vmem>>, vector<1x32xf32>
      %141 = vector.broadcast %140 : vector<1x32xf32> to vector<8x32xf32>
      %142 = arith.addf %139, %141 : vector<8x32xf32>
      %143 = arith.addf %136, %142 : vector<8x32xf32>
      %cst_76 = arith.constant 0.000000e+00 : f32
      %144 = vector.broadcast %cst_76 : f32 to vector<8x32xf32>
      %145 = arith.maximumf %143, %144 : vector<8x32xf32>
      %c2_77 = arith.constant 2 : index
      %c0_78 = arith.constant 0 : index
      %c0_79 = arith.constant 0 : index
      %146 = vector.load %arg12[%c2_77, %c0_78, %c0_79] : memref<5x32x32xf32, #tpu.memory_space<vmem>>, vector<1x32x32xf32>
      %147 = vector.shape_cast %146 : vector<1x32x32xf32> to vector<32x32xf32>
      %cst_80 = arith.constant dense<0.000000e+00> : vector<8x32xf32>
      %148 = tpu.matmul %145, %147, %cst_80 {dimension_numbers = #tpu.dot_dimension_numbers<[1], [0], [0], [1], [0, 0, 1, 1], [], []>} : vector<8x32xf32>, vector<32x32xf32>, vector<8x32xf32> -> vector<8x32xf32>
      %c2_81 = arith.constant 2 : index
      %c0_82 = arith.constant 0 : index
      %149 = vector.load %arg13[%c2_81, %c0_82] : memref<5x32xf32, #tpu.memory_space<vmem>>, vector<1x32xf32>
      %150 = vector.broadcast %149 : vector<1x32xf32> to vector<8x32xf32>
      %151 = arith.addf %148, %150 : vector<8x32xf32>
      %cst_83 = arith.constant 0.000000e+00 : f32
      %152 = vector.broadcast %cst_83 : f32 to vector<8x32xf32>
      %153 = arith.maximumf %151, %152 : vector<8x32xf32>
      %c2_84 = arith.constant 2 : index
      %c0_85 = arith.constant 0 : index
      %c0_86 = arith.constant 0 : index
      %154 = vector.load %arg14[%c2_84, %c0_85, %c0_86] : memref<5x32x32xf32, #tpu.memory_space<vmem>>, vector<1x32x32xf32>
      %155 = vector.shape_cast %154 : vector<1x32x32xf32> to vector<32x32xf32>
      %cst_87 = arith.constant dense<0.000000e+00> : vector<8x32xf32>
      %156 = tpu.matmul %153, %155, %cst_87 {dimension_numbers = #tpu.dot_dimension_numbers<[1], [0], [0], [1], [0, 0, 1, 1], [], []>} : vector<8x32xf32>, vector<32x32xf32>, vector<8x32xf32> -> vector<8x32xf32>
      %c2_88 = arith.constant 2 : index
      %c0_89 = arith.constant 0 : index
      %157 = vector.load %arg15[%c2_88, %c0_89] : memref<5x32xf32, #tpu.memory_space<vmem>>, vector<1x32xf32>
      %158 = vector.broadcast %157 : vector<1x32xf32> to vector<8x32xf32>
      %159 = arith.addf %156, %158 : vector<8x32xf32>
      %160 = arith.addf %143, %159 : vector<8x32xf32>
      %c3 = arith.constant 3 : index
      %c0_90 = arith.constant 0 : index
      %c0_91 = arith.constant 0 : index
      %161 = vector.load %arg10[%c3, %c0_90, %c0_91] : memref<5x8x32xf32, #tpu.memory_space<vmem>>, vector<1x8x32xf32>
      %162 = vector.shape_cast %161 : vector<1x8x32xf32> to vector<8x32xf32>
      %cst_92 = arith.constant dense<0.000000e+00> : vector<8x32xf32>
      %163 = tpu.matmul %81, %162, %cst_92 {dimension_numbers = #tpu.dot_dimension_numbers<[1], [0], [0], [1], [0, 0, 1, 1], [], []>} : vector<8x8xf32>, vector<8x32xf32>, vector<8x32xf32> -> vector<8x32xf32>
      %c3_93 = arith.constant 3 : index
      %c0_94 = arith.constant 0 : index
      %164 = vector.load %arg11[%c3_93, %c0_94] : memref<5x32xf32, #tpu.memory_space<vmem>>, vector<1x32xf32>
      %165 = vector.broadcast %164 : vector<1x32xf32> to vector<8x32xf32>
      %166 = arith.addf %163, %165 : vector<8x32xf32>
      %167 = arith.addf %160, %166 : vector<8x32xf32>
      %cst_95 = arith.constant 0.000000e+00 : f32
      %168 = vector.broadcast %cst_95 : f32 to vector<8x32xf32>
      %169 = arith.maximumf %167, %168 : vector<8x32xf32>
      %c3_96 = arith.constant 3 : index
      %c0_97 = arith.constant 0 : index
      %c0_98 = arith.constant 0 : index
      %170 = vector.load %arg12[%c3_96, %c0_97, %c0_98] : memref<5x32x32xf32, #tpu.memory_space<vmem>>, vector<1x32x32xf32>
      %171 = vector.shape_cast %170 : vector<1x32x32xf32> to vector<32x32xf32>
      %cst_99 = arith.constant dense<0.000000e+00> : vector<8x32xf32>
      %172 = tpu.matmul %169, %171, %cst_99 {dimension_numbers = #tpu.dot_dimension_numbers<[1], [0], [0], [1], [0, 0, 1, 1], [], []>} : vector<8x32xf32>, vector<32x32xf32>, vector<8x32xf32> -> vector<8x32xf32>
      %c3_100 = arith.constant 3 : index
      %c0_101 = arith.constant 0 : index
      %173 = vector.load %arg13[%c3_100, %c0_101] : memref<5x32xf32, #tpu.memory_space<vmem>>, vector<1x32xf32>
      %174 = vector.broadcast %173 : vector<1x32xf32> to vector<8x32xf32>
      %175 = arith.addf %172, %174 : vector<8x32xf32>
      %cst_102 = arith.constant 0.000000e+00 : f32
      %176 = vector.broadcast %cst_102 : f32 to vector<8x32xf32>
      %177 = arith.maximumf %175, %176 : vector<8x32xf32>
      %c3_103 = arith.constant 3 : index
      %c0_104 = arith.constant 0 : index
      %c0_105 = arith.constant 0 : index
      %178 = vector.load %arg14[%c3_103, %c0_104, %c0_105] : memref<5x32x32xf32, #tpu.memory_space<vmem>>, vector<1x32x32xf32>
      %179 = vector.shape_cast %178 : vector<1x32x32xf32> to vector<32x32xf32>
      %cst_106 = arith.constant dense<0.000000e+00> : vector<8x32xf32>
      %180 = tpu.matmul %177, %179, %cst_106 {dimension_numbers = #tpu.dot_dimension_numbers<[1], [0], [0], [1], [0, 0, 1, 1], [], []>} : vector<8x32xf32>, vector<32x32xf32>, vector<8x32xf32> -> vector<8x32xf32>
      %c3_107 = arith.constant 3 : index
      %c0_108 = arith.constant 0 : index
      %181 = vector.load %arg15[%c3_107, %c0_108] : memref<5x32xf32, #tpu.memory_space<vmem>>, vector<1x32xf32>
      %182 = vector.broadcast %181 : vector<1x32xf32> to vector<8x32xf32>
      %183 = arith.addf %180, %182 : vector<8x32xf32>
      %184 = arith.addf %167, %183 : vector<8x32xf32>
      %c4 = arith.constant 4 : index
      %c0_109 = arith.constant 0 : index
      %c0_110 = arith.constant 0 : index
      %185 = vector.load %arg10[%c4, %c0_109, %c0_110] : memref<5x8x32xf32, #tpu.memory_space<vmem>>, vector<1x8x32xf32>
      %186 = vector.shape_cast %185 : vector<1x8x32xf32> to vector<8x32xf32>
      %cst_111 = arith.constant dense<0.000000e+00> : vector<8x32xf32>
      %187 = tpu.matmul %81, %186, %cst_111 {dimension_numbers = #tpu.dot_dimension_numbers<[1], [0], [0], [1], [0, 0, 1, 1], [], []>} : vector<8x8xf32>, vector<8x32xf32>, vector<8x32xf32> -> vector<8x32xf32>
      %c4_112 = arith.constant 4 : index
      %c0_113 = arith.constant 0 : index
      %188 = vector.load %arg11[%c4_112, %c0_113] : memref<5x32xf32, #tpu.memory_space<vmem>>, vector<1x32xf32>
      %189 = vector.broadcast %188 : vector<1x32xf32> to vector<8x32xf32>
      %190 = arith.addf %187, %189 : vector<8x32xf32>
      %191 = arith.addf %184, %190 : vector<8x32xf32>
      %cst_114 = arith.constant 0.000000e+00 : f32
      %192 = vector.broadcast %cst_114 : f32 to vector<8x32xf32>
      %193 = arith.maximumf %191, %192 : vector<8x32xf32>
      %c4_115 = arith.constant 4 : index
      %c0_116 = arith.constant 0 : index
      %c0_117 = arith.constant 0 : index
      %194 = vector.load %arg12[%c4_115, %c0_116, %c0_117] : memref<5x32x32xf32, #tpu.memory_space<vmem>>, vector<1x32x32xf32>
      %195 = vector.shape_cast %194 : vector<1x32x32xf32> to vector<32x32xf32>
      %cst_118 = arith.constant dense<0.000000e+00> : vector<8x32xf32>
      %196 = tpu.matmul %193, %195, %cst_118 {dimension_numbers = #tpu.dot_dimension_numbers<[1], [0], [0], [1], [0, 0, 1, 1], [], []>} : vector<8x32xf32>, vector<32x32xf32>, vector<8x32xf32> -> vector<8x32xf32>
      %c4_119 = arith.constant 4 : index
      %c0_120 = arith.constant 0 : index
      %197 = vector.load %arg13[%c4_119, %c0_120] : memref<5x32xf32, #tpu.memory_space<vmem>>, vector<1x32xf32>
      %198 = vector.broadcast %197 : vector<1x32xf32> to vector<8x32xf32>
      %199 = arith.addf %196, %198 : vector<8x32xf32>
      %cst_121 = arith.constant 0.000000e+00 : f32
      %200 = vector.broadcast %cst_121 : f32 to vector<8x32xf32>
      %201 = arith.maximumf %199, %200 : vector<8x32xf32>
      %c4_122 = arith.constant 4 : index
      %c0_123 = arith.constant 0 : index
      %c0_124 = arith.constant 0 : index
      %202 = vector.load %arg14[%c4_122, %c0_123, %c0_124] : memref<5x32x32xf32, #tpu.memory_space<vmem>>, vector<1x32x32xf32>
      %203 = vector.shape_cast %202 : vector<1x32x32xf32> to vector<32x32xf32>
      %cst_125 = arith.constant dense<0.000000e+00> : vector<8x32xf32>
      %204 = tpu.matmul %201, %203, %cst_125 {dimension_numbers = #tpu.dot_dimension_numbers<[1], [0], [0], [1], [0, 0, 1, 1], [], []>} : vector<8x32xf32>, vector<32x32xf32>, vector<8x32xf32> -> vector<8x32xf32>
      %c4_126 = arith.constant 4 : index
      %c0_127 = arith.constant 0 : index
      %205 = vector.load %arg15[%c4_126, %c0_127] : memref<5x32xf32, #tpu.memory_space<vmem>>, vector<1x32xf32>
      %206 = vector.broadcast %205 : vector<1x32xf32> to vector<8x32xf32>
      %207 = arith.addf %204, %206 : vector<8x32xf32>
      %208 = arith.addf %191, %207 : vector<8x32xf32>
      %cst_128 = arith.constant 0.000000e+00 : f32
      %209 = vector.broadcast %cst_128 : f32 to vector<8x32xf32>
      %210 = arith.maximumf %208, %209 : vector<8x32xf32>
      %c0_129 = arith.constant 0 : index
      %c0_130 = arith.constant 0 : index
      %211 = vector.load %arg16[%c0_129, %c0_130] : memref<32x128xf32, #tpu.memory_space<vmem>>, vector<32x128xf32>
      %cst_131 = arith.constant dense<0.000000e+00> : vector<8x128xf32>
      %212 = tpu.matmul %210, %211, %cst_131 {dimension_numbers = #tpu.dot_dimension_numbers<[1], [0], [0], [1], [0, 0, 1, 1], [], []>} : vector<8x32xf32>, vector<32x128xf32>, vector<8x128xf32> -> vector<8x128xf32>
      %c0_132 = arith.constant 0 : index
      %c0_133 = arith.constant 0 : index
      %213 = vector.load %arg17[%c0_132, %c0_133] : memref<1x128xf32, #tpu.memory_space<vmem>>, vector<1x128xf32>
      %214 = vector.broadcast %213 : vector<1x128xf32> to vector<8x128xf32>
      %215 = arith.addf %212, %214 : vector<8x128xf32>
      %c0_134 = arith.constant 0 : index
      %c0_135 = arith.constant 0 : index
      %c0_136 = arith.constant 0 : index
      %216 = vector.load %arg18[%c0_134, %c0_135, %c0_136] : memref<1x8x128xf32, #tpu.memory_space<vmem>>, vector<1x8x128xf32>
      %217 = vector.shape_cast %216 : vector<1x8x128xf32> to vector<8x128xf32>
      %218 = vector.shape_cast %215 : vector<8x128xf32> to vector<1x8x128xf32>
      tpu.vector_store %arg18[%c0_134, %c0_135, %c0_136], %218 {strides = array<i32>} : memref<1x8x128xf32, #tpu.memory_space<vmem>>, vector<1x8x128xf32>,
    } else {
    }
    return
  }
  func.func @transform_0(%arg0: i32, %arg1: i32, %arg2: i32, %arg3: memref<5xi32, #tpu.memory_space<smem>>) -> (i32, i32, i32, i32) {
    %0 = arith.index_cast %arg2 : i32 to index
    %1 = memref.load %arg3[%0] : memref<5xi32, #tpu.memory_space<smem>>
    %c0_i32 = arith.constant 0 : i32
    %c0_i32_0 = arith.constant 0 : i32
    return %1, %arg0, %arg1, %c0_i32 : i32, i32, i32, i32
  }
  func.func @transform_1(%arg0: i32, %arg1: i32, %arg2: i32, %arg3: memref<5xi32, #tpu.memory_space<smem>>) -> (i32, i32) {
    %c0_i32 = arith.constant 0 : i32
    %c0_i32_0 = arith.constant 0 : i32
    return %c0_i32, %arg2 : i32, i32
  }
  func.func @transform_2(%arg0: i32, %arg1: i32, %arg2: i32, %arg3: memref<5xi32, #tpu.memory_space<smem>>) -> (i32, i32, i32) {
    %c0_i32 = arith.constant 0 : i32
    %c0_i32_0 = arith.constant 0 : i32
    return %arg0, %c0_i32, %arg2 : i32, i32, i32
  }
  func.func @transform_3(%arg0: i32, %arg1: i32, %arg2: i32, %arg3: memref<5xi32, #tpu.memory_space<smem>>) -> (i32, i32, i32) {
    %c0_i32 = arith.constant 0 : i32
    %c0_i32_0 = arith.constant 0 : i32
    return %arg0, %arg1, %c0_i32 : i32, i32, i32
  }
  func.func @transform_4(%arg0: i32, %arg1: i32, %arg2: i32, %arg3: memref<5xi32, #tpu.memory_space<smem>>) -> (i32, i32) {
    %c0_i32 = arith.constant 0 : i32
    %c0_i32_0 = arith.constant 0 : i32
    %c0_i32_1 = arith.constant 0 : i32
    return %c0_i32, %c0_i32_0 : i32, i32
  }
  func.func @transform_5(%arg0: i32, %arg1: i32, %arg2: i32, %arg3: memref<5xi32, #tpu.memory_space<smem>>) -> (i32, i32) {
    %c0_i32 = arith.constant 0 : i32
    %c0_i32_0 = arith.constant 0 : i32
    %c0_i32_1 = arith.constant 0 : i32
    return %c0_i32, %c0_i32_0 : i32, i32
  }
  func.func @transform_6(%arg0: i32, %arg1: i32, %arg2: i32, %arg3: memref<5xi32, #tpu.memory_space<smem>>) -> (i32, i32, i32) {
    %c0_i32 = arith.constant 0 : i32
    %c0_i32_0 = arith.constant 0 : i32
    %c0_i32_1 = arith.constant 0 : i32
    %c0_i32_2 = arith.constant 0 : i32
    return %c0_i32, %c0_i32_0, %c0_i32_1 : i32, i32, i32
  }
  func.func @transform_7(%arg0: i32, %arg1: i32, %arg2: i32, %arg3: memref<5xi32, #tpu.memory_space<smem>>) -> (i32, i32) {
    %c0_i32 = arith.constant 0 : i32
    %c0_i32_0 = arith.constant 0 : i32
    %c0_i32_1 = arith.constant 0 : i32
    return %c0_i32, %c0_i32_0 : i32, i32
  }
  func.func @transform_8(%arg0: i32, %arg1: i32, %arg2: i32, %arg3: memref<5xi32, #tpu.memory_space<smem>>) -> (i32, i32, i32) {
    %c0_i32 = arith.constant 0 : i32
    %c0_i32_0 = arith.constant 0 : i32
    %c0_i32_1 = arith.constant 0 : i32
    %c0_i32_2 = arith.constant 0 : i32
    return %c0_i32, %c0_i32_0, %c0_i32_1 : i32, i32, i32
  }
  func.func @transform_9(%arg0: i32, %arg1: i32, %arg2: i32, %arg3: memref<5xi32, #tpu.memory_space<smem>>) -> (i32, i32) {
    %c0_i32 = arith.constant 0 : i32
    %c0_i32_0 = arith.constant 0 : i32
    %c0_i32_1 = arith.constant 0 : i32
    return %c0_i32, %c0_i32_0 : i32, i32
  }
  func.func @transform_10(%arg0: i32, %arg1: i32, %arg2: i32, %arg3: memref<5xi32, #tpu.memory_space<smem>>) -> (i32, i32, i32) {
    %c0_i32 = arith.constant 0 : i32
    %c0_i32_0 = arith.constant 0 : i32
    %c0_i32_1 = arith.constant 0 : i32
    %c0_i32_2 = arith.constant 0 : i32
    return %c0_i32, %c0_i32_0, %c0_i32_1 : i32, i32, i32
  }
  func.func @transform_11(%arg0: i32, %arg1: i32, %arg2: i32, %arg3: memref<5xi32, #tpu.memory_space<smem>>) -> (i32, i32) {
    %c0_i32 = arith.constant 0 : i32
    %c0_i32_0 = arith.constant 0 : i32
    %c0_i32_1 = arith.constant 0 : i32
    return %c0_i32, %c0_i32_0 : i32, i32
  }
  func.func @transform_12(%arg0: i32, %arg1: i32, %arg2: i32, %arg3: memref<5xi32, #tpu.memory_space<smem>>) -> (i32, i32) {
    %c0_i32 = arith.constant 0 : i32
    %c0_i32_0 = arith.constant 0 : i32
    %c0_i32_1 = arith.constant 0 : i32
    return %c0_i32, %c0_i32_0 : i32, i32
  }
  func.func @transform_13(%arg0: i32, %arg1: i32, %arg2: i32, %arg3: memref<5xi32, #tpu.memory_space<smem>>) -> (i32, i32) {
    %c0_i32 = arith.constant 0 : i32
    %c0_i32_0 = arith.constant 0 : i32
    %c0_i32_1 = arith.constant 0 : i32
    return %c0_i32, %c0_i32_0 : i32, i32
  }
  func.func @transform_14(%arg0: i32, %arg1: i32, %arg2: i32, %arg3: memref<5xi32, #tpu.memory_space<smem>>) -> (i32, i32, i32) {
    %c0_i32 = arith.constant 0 : i32
    %c0_i32_0 = arith.constant 0 : i32
    return %arg0, %arg1, %c0_i32 : i32, i32, i32
  }
}

</mosaic_0001>

<bundles_post_ra>
// kernel: tpu_custom_call.1
= control target key start
LH: loop header
LB: loop body
LE: loop exit
PB: predicated region body
PF: predicated region fallthrough
CT: control target
= control target key end

     0   :  { %s3388_s18 = smov [#allocation4]   ;;  %s3949_s0 = inlined_call_operand.hbm [shape: s32[5], index: 0, kind: input, shape index: {}]   ;;  %s3950_s1 = inlined_call_operand.vmem [shape: f32[4,2,8,3], index: 1, kind: input, shape index: {}]   ;;  %s3951_s2 = inlined_call_operand.hbm [shape: s32[3,1280], index: 2, kind: input, shape index: {}]   ;;  %s3952_s3 = inlined_call_operand.vmem [shape: bf16[2,8,1280], index: 3, kind: input, shape index: {}]   ;;  %s3953_s4 = inlined_call_operand.vmem [shape: f32[2,8,3], index: 4, kind: input, shape index: {}]   ;;  %s3954_s5 = inlined_call_operand.hbm [shape: f32[3,32], index: 5, kind: input, shape index: {}]   ;;  %s3955_s6 = inlined_call_operand.hbm [shape: f32[1,32], index: 6, kind: input, shape index: {}]   ;;  %s3956_s7 = inlined_call_operand.vmem [shape: f32[5,8,32], index: 7, kind: input, shape index: {}]   ;;  %s3957_s8 = inlined_call_operand.hbm [shape: f32[5,32], index: 8, kind: input, shape index: {}]   ;;  %s3958_s9 = inlined_call_operand.hbm [shape: f32[5,32,32], index: 9, kind: input, shape index: {}]   ;;  %s3959_s10 = inlined_call_operand.vmem [shape: f32[5,32], index: 10, kind: input, shape index: {}]   ;;  %s3960_s11 = inlined_call_operand.hbm [shape: f32[5,32,32], index: 11, kind: input, shape index: {}]   ;;  %s3961_s12 = inlined_call_operand.hbm [shape: f32[5,32], index: 12, kind: input, shape index: {}]   ;;  %s3962_s13 = inlined_call_operand.hbm [shape: f32[32,128], index: 13, kind: input, shape index: {}]   ;;  %s3963_s14 = inlined_call_operand.vmem [shape: f32[1,128], index: 14, kind: input, shape index: {}]   ;;  %s3964_s15 = inlined_call_operand.hbm [shape: f32[2,8,128], index: 15, kind: output, shape index: {}]  }
   0x1   :  { %3978 = sst [smem:[#allocation34_spill]] %s3950_s1 }
   0x2   :  { %3979 = sst [smem:[#allocation35_spill]] %s3951_s2 }
   0x3   :  { %3980 = sst [smem:[#allocation36_spill]] %s3952_s3 }
   0x4   :  { %3981 = sst [smem:[#allocation37_spill]] %s3953_s4 }
   0x5   :  { %3982 = sst [smem:[#allocation38_spill]] %s3954_s5 }
   0x6   :  { %3983 = sst [smem:[#allocation39_spill]] %s3955_s6 }
   0x7   :  { %3984 = sst [smem:[#allocation40_spill]] %s3956_s7 }
   0x8   :  { %3985 = sst [smem:[#allocation41_spill]] %s3957_s8 }
   0x9   :  { %3986 = sst [smem:[#allocation42_spill]] %s3958_s9 }
   0xa   :  { %3987 = sst [smem:[#allocation43_spill]] %s3959_s10 }
   0xb   :  { %3988 = sst [smem:[#allocation44_spill]] %s3960_s11 }
   0xc   :  { %3989 = sst [smem:[#allocation45_spill]] %s3961_s12 }
   0xd   :  { %3990 = sst [smem:[#allocation46_spill]] %s3962_s13 }
   0xe   :  { %3991 = sst [smem:[#allocation47_spill]] %s3963_s14 }
   0xf   :  { %3992 = sst [smem:[#allocation48_spill]] %s3964_s15 }
  0x10   :  { %21 = dma.hbm_to_smem %s3949_s0, 16, %s3388_s18, [#allocation3] }
  0x11   :  { %3318 = dma.done.wait [#allocation3], 16 }
  0x12   :  { %3319 = vsyncadd [#allocation3], 4294967280 }
  0x13   :  { %23 = sfence }
  0x14   :  { %24 = vsyncpa [#allocation6], 0 }
  0x15   :  { %26 = vsyncpa [#allocation6 + $0x1], 0 }
  0x16   :  { %27 = vsyncpa [#allocation9], 0 }
  0x17   :  { %28 = vsyncpa [#allocation12], 0 }
  0x18   :  { %29 = vsyncpa [#allocation15], 0 }
  0x19   :  { %30 = vsyncpa [#allocation18], 0 }
  0x1a   :  { %31 = vsyncpa [#allocation7], 0 }
  0x1b   :  { %33 = vsyncpa [#allocation7 + $0x1], 0  ;;  %s3489_s21 = smov 0   ;;  %s3491_s22 = smov 0  }
  0x1c   :  { %s3493_s23 = smov 0   ;;  %s3495_s24 = smov 0  }
  0x1d   :  { %s3497_s0 = smov 0   ;;  %s3499_s25 = smov 0  }
  0x1e   :  { %s3501_s26 = smov 0   ;;  %s3503_s27 = smov 0  }
  0x1f   :  { %s3505_s28 = smov 0   ;;  %s3507_s29 = smov 0  }
  0x20   :  { %s3509_s30 = smov 0  }
  0x21 LB: > { %3993 = sst [smem:[#allocation27_spill]] %s3366_s25  ;;  %s3966_s16 = sadd.s32 4294967295, %s3386_s30   ;;  %s3386_s30 = sphi %s3509_s30, %s39_s30   ;;  %s3382_s29 = sphi %s3507_s29, %s4036_s29   ;;  %s3378_s28 = sphi %s3505_s28, %s4035_s28   ;;  %s3374_s27 = sphi %s3503_s27, %s4034_s27   ;;  %s3370_s26 = sphi %s3501_s26, %s4042_s26   ;;  %s3366_s25 = sphi %s3499_s25, %s4032_s25   ;;  %s3362_s0 = sphi %s3497_s0, %s4041_s0   ;;  %s3358_s24 = sphi %s3495_s24, %s4040_s24   ;;  %s3354_s23 = sphi %s3493_s23, %s4039_s23   ;;  %s3350_s22 = sphi %s3491_s22, %s4038_s22   ;;  %s3346_s21 = sphi %s3489_s21, %s4037_s21  }
  0x22   : > { %3994 = sst [smem:[#allocation28_spill]] %s3370_s26  ;;  %p2543_p0 = scmp.ge.s32.totalorder %s3386_s30, 1 }
  0x23   : > { %3995 = sst [smem:[#allocation29_spill]] %s3378_s28  ;;  %p3548_p1 = scmp.eq.s32.totalorder %s3966_s16, 0 }
  0x24   : > { %3996 = sst [smem:[#allocation30_spill]] %s3382_s29  ;;  %p415_p2 = scmp.lt.s32.totalorder %s3386_s30, 11 }
  0x25   : > { %s3997_s17 = scalar_select %p3548_p1, 1, 0 }
  0x26   : > { %p3553_p3 = pnand %p2543_p0, %p415_p2  ;;  %s3389_s19 = smov [#allocation8]  }
  0x27   : > { %s428_s20 = sshll.u32 %s3389_s19, 4  ;;  %s3390_s15 = smov [#allocation11]   ;;  %s429_s20 = int_to_ptr.vmem [resolvable:$true] %s428_s20 }
  0x28   : > { %s3998_s18 = scalar_select %p3553_p3, 1, 0 }
  0x29   : > { %p2871_p4 = pneg %p3553_p3  ;;  %s453_s14 = sshll.u32 %s3390_s15, 4  ;;  %s454_s14 = int_to_ptr.vmem [resolvable:$true] %s453_s14 }
  0x2a   : > { %s3391_s10 = smov [#allocation14]   ;;  %s3049_s19 = scalar_lea.vmem %s429_s20, 64 }
  0x2b   : > { %p3561_p5 = pnand %p2871_p4, %p3548_p1  ;;  %s479_s7 = sshll.u32 %s3391_s10, 4  ;;  %s480_s7 = int_to_ptr.vmem [resolvable:$true] %s479_s7 }
  0x2c   : > { %p3050_p7 = scmp.ne.s32.totalorder %s429_s20, %s3049_s19  ;;  %p3057_p10 = scmp.lt.s32.totalorder %s429_s20, %s429_s20 }
  0x2d   : > { %p3567_p6 = pneg %p3561_p5  ;;  %p3058_p11 = scmp.lt.s32.totalorder %s3049_s19, %s3049_s19 }
  0x2f   : > { %p3052_p8 = pnand %p3050_p7, %p3567_p6  ;;  %p3059_p12 = por %p3058_p11, %p3057_p10 }
  0x31   : > { %p3053_p9 = pneg %p3052_p8 }
  0x33   : > { %p3060_p13 = pnand %p3059_p12, %p3053_p9 }
  0x35   : > { %3063 = shalt.err (!%p3060_p13)
}
  0x36   : > { %s4001_s5 = sld [smem:[#allocation38_spill]]  ;;  %s3075_s3 = scalar_lea.vmem %s454_s14, 128 }
  0x37   : > { %p3076_p0 = scmp.ne.s32.totalorder %s454_s14, %s3075_s3  ;;  %p3083_p3 = scmp.lt.s32.totalorder %s454_s14, %s454_s14 }
  0x38   : > { %p3084_p7 = scmp.lt.s32.totalorder %s3075_s3, %s3075_s3 }
  0x39   : > { %p3078_p2 = pnand %p3076_p0, %p3567_p6 }
  0x3a   : > { %p3085_p8 = por %p3084_p7, %p3083_p3 }
  0x3b   : > { %p3079_p4 = pneg %p3078_p2 }
  0x3c   : > { %2874 = dma.hbm_to_vmem [thread:$0]  (!%p3561_p5), %s4001_s5, 64, %s429_s20, [#allocation9]  }
  0x3d   : > { %p3086_p1 = pnand %p3085_p8, %p3079_p4 }
  0x3f   : > { %3089 = shalt.err (!%p3086_p1)
}
  0x40   : > { %s4002_s8 = sld [smem:[#allocation41_spill]]  ;;  %s3101_s15 = scalar_lea.vmem %s480_s7, 2560 }
  0x41   : > { %p3102_p9 = scmp.ne.s32.totalorder %s480_s7, %s3101_s15  ;;  %p3109_p12 = scmp.lt.s32.totalorder %s480_s7, %s480_s7 }
  0x42   : > { %p3110_p13 = scmp.lt.s32.totalorder %s3101_s15, %s3101_s15 }
  0x43   : > { %p3104_p10 = pnand %p3102_p9, %p3567_p6 }
  0x44   : > { %p3111_p0 = por %p3110_p13, %p3109_p12 }
  0x45   : > { %p3105_p11 = pneg %p3104_p10 }
  0x46   : > { %2880 = dma.hbm_to_vmem [thread:$0]  (!%p3561_p5), %s4002_s8, 128, %s454_s14, [#allocation12]  }
  0x47   : > { %p3112_p2 = pnand %p3111_p0, %p3105_p11 }
  0x49   : > { %3115 = shalt.err (!%p3112_p2)
}
  0x4a   : > { %s3392_s3 = smov 128   ;;  %s3393_s20 = smov 8  }
  0x4b   : > { %s4003_s11 = sld [smem:[#allocation44_spill]]  ;;  %s3394_s10 = smov [#allocation10]  }
  0x4c   : > { %s439_s19 = sshll.u32 %s3394_s10, 4  ;;  %s3395_s5 = smov [#allocation13]   ;;  %s440_s19 = int_to_ptr.vmem [resolvable:$true] %s439_s19 }
  0x4d   : > { %s463_s15 = sshll.u32 %s3395_s5, 4  ;;  %s3127_s8 = scalar_lea.vmem %s440_s19, 16  ;;  %s464_s15 = int_to_ptr.vmem [resolvable:$true] %s463_s15 }
  0x4e   : > { %p3128_p1 = scmp.ne.s32.totalorder %s440_s19, %s3127_s8  ;;  %s3134_s26 = scalar_lea.vmem %s440_s19, 32 }
  0x4f   : > { %p3135_p7 = scmp.lt.s32.totalorder %s440_s19, %s440_s19  ;;  %p3136_p8 = scmp.lt.s32.totalorder %s3134_s26, %s3127_s8 }
  0x50   : > { %p3130_p3 = pnand %p3128_p1, %p3567_p6 }
  0x51   : > { %2886 = dma.hbm_to_vmem [thread:$0]  (!%p3561_p5), %s4003_s11, 2560, %s480_s7, [#allocation15], %s3392_s3, %s3392_s3, %s3393_s20  }
  0x52   : > { %p3131_p4 = pneg %p3130_p3  ;;  %p3137_p9 = por %p3136_p8, %p3135_p7 }
  0x54   : > { %p3138_p10 = pnand %p3137_p9, %p3131_p4 }
  0x56   : > { %3141 = shalt.err (!%p3138_p10)
}
  0x57   : > { %s4004_s6 = sld [smem:[#allocation39_spill]]  ;;  %s3153_s5 = scalar_lea.vmem %s464_s15, 2560 }
  0x58   : > { %p3154_p11 = scmp.ne.s32.totalorder %s464_s15, %s3153_s5  ;;  %p3161_p0 = scmp.lt.s32.totalorder %s464_s15, %s464_s15 }
  0x59   : > { %p3162_p2 = scmp.lt.s32.totalorder %s3153_s5, %s3153_s5 }
  0x5a   : > { %p3156_p12 = pnand %p3154_p11, %p3567_p6 }
  0x5b   : > { %p3163_p1 = por %p3162_p2, %p3161_p0 }
  0x5c   : > { %p3157_p13 = pneg %p3156_p12 }
  0x5d   : > { %2877 = dma.hbm_to_vmem [thread:$0]  (!%p3561_p5), %s4004_s6, 16, %s440_s19, [#allocation9]  }
  0x5e   : > { %p3164_p3 = pnand %p3163_p1, %p3157_p13 }
  0x60   : > { %3167 = shalt.err (!%p3164_p3)
}
  0x61   : > { %s4005_s9 = sld [smem:[#allocation42_spill]]  ;;  %s3396_s14 = smov [#allocation16]  }
  0x62   : > { %s493_s10 = sshll.u32 %s3396_s14, 4  ;;  %s3397_s19 = smov [#allocation17]   ;;  %s494_s10 = int_to_ptr.vmem [resolvable:$true] %s493_s10 }
  0x63   : > { %s503_s4 = sshll.u32 %s3397_s19, 4  ;;  %s3179_s7 = scalar_lea.vmem %s494_s10, 128  ;;  %s504_s4 = int_to_ptr.vmem [resolvable:$true] %s503_s4 }
  0x64   : > { %p3180_p4 = scmp.ne.s32.totalorder %s494_s10, %s3179_s7  ;;  %p3187_p9 = scmp.lt.s32.totalorder %s494_s10, %s494_s10 }
  0x65   : > { %p3188_p10 = scmp.lt.s32.totalorder %s3179_s7, %s3179_s7 }
  0x66   : > { %p3182_p7 = pnand %p3180_p4, %p3567_p6 }
  0x67   : > { %2883 = dma.hbm_to_vmem [thread:$0]  (!%p3561_p5), %s4005_s9, 2560, %s464_s15, [#allocation12], %s3392_s3, %s3392_s3, %s3393_s20  }
  0x68   : > { %p3183_p8 = pneg %p3182_p7  ;;  %p3189_p11 = por %p3188_p10, %p3187_p9 }
  0x6a   : > { %p3190_p12 = pnand %p3189_p11, %p3183_p8 }
  0x6c   : > { %3193 = shalt.err (!%p3190_p12)
}
  0x6d   : > { %s4006_s12 = sld [smem:[#allocation45_spill]]  ;;  %s3205_s15 = scalar_lea.vmem %s504_s4, 512 }
  0x6e   : > { %p3206_p13 = scmp.ne.s32.totalorder %s504_s4, %s3205_s15  ;;  %p3213_p1 = scmp.lt.s32.totalorder %s504_s4, %s504_s4 }
  0x6f   : > { %p3214_p3 = scmp.lt.s32.totalorder %s3205_s15, %s3205_s15 }
  0x70   : > { %p3208_p0 = pnand %p3206_p13, %p3567_p6 }
  0x71   : > { %p3215_p4 = por %p3214_p3, %p3213_p1 }
  0x72   : > { %p3209_p2 = pneg %p3208_p0 }
  0x73   : > { %2889 = dma.hbm_to_vmem [thread:$0]  (!%p3561_p5), %s4006_s12, 128, %s494_s10, [#allocation15]  }
  0x74   : > { %p3216_p7 = pnand %p3215_p4, %p3209_p2 }
  0x76   : > { %3219 = shalt.err (!%p3216_p7)
}
  0x77   : > { %s4007_s13 = sld [smem:[#allocation46_spill]]  ;;  %s2542_s1 = sadd.s32 4294967294, %s3386_s30  }
  0x78   : > { %s51_s16 = sadd.s32 1, %s3378_s28  ;;  %s58_s10 = sadd.s32 1, %s3382_s29 }
  0x79   : > { %p52_p6 = scmp.ge.s32.totalorder %s51_s16, 5  ;;  %s97_s19 = sadd.s32 1, %s3366_s25 }
  0x7a   : > { %p104_p8 = scmp.ne.s32.totalorder %s3366_s25, %s3362_s0  ;;  %p105_p9 = scmp.eq.s32.totalorder %s3386_s30, 0 }
  0x7b   : > { %s4044_s16 = smov (%p52_p6, %s51_s16), 0  ;;  %s4046_s10 = smov (!%p52_p6, %s58_s10), %s3382_s29 }
  0x7c   : > { %4008 = sst [smem:[#allocation31_spill]] %s4044_s16  ;;  %p60_p10 = scmp.ge.s32.totalorder %s4046_s10, 2 }
  0x7d   : > { %2892 = dma.hbm_to_vmem [thread:$0]  (!%p3561_p5), %s4007_s13, 512, %s504_s4, [#allocation18], %s3392_s3, %s3392_s3, %s3393_s20  }
  0x7e   : > { %s94_s3 = ssub.s32 %s3378_s28, %s4044_s16  ;;  %p3641_p5 = por %p105_p9, %p104_p8 }
  0x7f   : > { %p95_p11 = scmp.eq.s32.totalorder %s94_s3, 0  ;;  %p110_p12 = scmp.ne.s32.totalorder %s3362_s0, %s3358_s24 }
  0x80   : > { %s391_s4 = sadd.s32 1, %s3354_s23  ;;  %s4048_s10 = smov (%p60_p10, %s4046_s10), 0 }
  0x81   : > { %4010 = sst [smem:[#allocation32_spill]] %s4048_s10  ;;  %p4012_p13 = scmp.ne.s32.totalorder %s3997_s17, 0 }
  0x82   : > { %s3651_s7 = scalar_select %p95_p11, %s3366_s25, %s97_s19  }
  0x83   : > { %p3655_p0 = por %p4012_p13, %p110_p12  ;;  %s386_s8 = ssub.s32 %s3382_s29, %s4048_s10 }
  0x84   : > { %4011 = sst [smem:[#allocation33_spill]] %s3651_s7  ;;  %p389_p2 = scmp.eq.s32.totalorder %s386_s8, 0 }
  0x85   : > { %p401_p1 = scmp.ne.s32.totalorder %s3354_s23, %s3350_s22  ;;  %s4014_s15 = sadd.s32 4294967295, %s3386_s30  }
  0x86   : > { %p402_p3 = scmp.eq.s32.totalorder %s4014_s15, 9  ;;  %p407_p4 = scmp.ne.s32.totalorder %s3350_s22, %s3346_s21 }
  0x87   : > { %s3668_s24 = scalar_select %p389_p2, %s3354_s23, %s391_s4  }
  0x88   : > { %p3670_p7 = por %p402_p3, %p401_p1  ;;  %p408_p6 = scmp.eq.s32.totalorder %s2542_s1, 9 }
  0x89   : > { %p2908_p8 = scmp.lt.s32.totalorder %s3386_s30, 10  ;;  %s536_s14 = sand.u32 1, %s3366_s25  }
  0x8a   : > { %p3676_p9 = por %p408_p6, %p407_p4  ;;  %s2552_s3 = sshll.u32 %s536_s14, 3 }
  0x8b   : > { %s2617_s6 = sshll.u32 %s3378_s28, 7  ;;  %s4017_s2 = sld [smem:[#allocation35_spill]] }
  0x8c   : > { %s540_s11 = scalar_lea.vmem [#allocation5], %s2552_s3  ;;  %p3686_p10 = pnand %p2908_p8, %p3641_p5 }
  0x8d   : > { %s548_s4 = sshll.u32 %s540_s11, 4  ;;  %s537_s1 = scalar_lea.sflag [#allocation6], %s536_s14  ;;  %s549_s4 = int_to_ptr.vmem [resolvable:$true] %s548_s4 }
  0x8e   : > { %p3222_p11 = pneg %p3686_p10  ;;  %s3233_s13 = scalar_lea.vmem %s549_s4, 128 }
  0x8f   : > { %p3234_p12 = scmp.ne.s32.totalorder %s549_s4, %s3233_s13  ;;  %s3398_s10 = smov [#allocation5]  }
  0x90   : > { %s3238_s16 = sshll.u32 %s3398_s10, 4  ;;  %s3239_s16 = int_to_ptr.vmem [resolvable:$false] %s3238_s16 }
  0x91   : > { %s546_s15 = scalar_lea.hbm %s4017_s2, %s2617_s6  ;;  %p3236_p13 = pnand %p3234_p12, %p3222_p11 }
  0x92   : > { %s3240_s6 = scalar_lea.vmem %s3239_s16, 256  ;;  %p3241_p1 = scmp.lt.s32.totalorder %s549_s4, %s3239_s16 }
  0x93   : > { %p3237_p2 = pneg %p3236_p13  ;;  %p3242_p3 = scmp.lt.s32.totalorder %s3240_s6, %s3233_s13 }
  0x95   : > { %p3243_p4 = por %p3242_p3, %p3241_p1 }
  0x97   : > { %p3244_p5 = pnand %p3243_p4, %p3237_p2 }
  0x99   : > { %3247 = shalt.err (!%p3244_p5)
}
  0x9a   : > { %2896 = dma.hbm_to_vmem [thread:$0]  (!%p3686_p10), %s546_s15, 128, %s549_s4, %s537_s1  }
  0x9b   : > { %p4019_p6 = scmp.ne.s32.totalorder %s3998_s18, 0 }
  0x9c   : > { %s582_s9 = sand.u32 (!%p4019_p6), 1, %s3362_s0  }
  0x9d   : > { %580 = sbr.rel (%p4019_p6) target bundleno = 2966 (0xb96), region = 76  ;;  %s3697_s11 = sshll.u32 (!%p4019_p6), %s582_s9, 3 }
  0x9e   : > { %s583_s10 = scalar_lea.sflag (!%p4019_p6), [#allocation6], %s582_s9 }
  0xa2   : > { %3321 = dma.done.wait (%p3655_p0), %s583_s10, 128  }
  0xa3   : > { %3323 = vsyncadd (%p3655_p0), %s583_s10, 4294967168  ;;  %p4020_p8 = scmp.ne.s32.totalorder %s3997_s17, 0 }
  0xa5   : > { %3325 = dma.done.wait (%p4020_p8), [#allocation9], 80  }
  0xa6   : > { %3327 = vsyncadd (%p4020_p8), [#allocation9], 4294967216 }
  0xa7   : > { %3329 = dma.done.wait (%p4020_p8), [#allocation12], 2688  }
  0xa8   : > { %3331 = vsyncadd (%p4020_p8), [#allocation12], 4294964608 }
  0xa9   : > { %3333 = dma.done.wait (%p4020_p8), [#allocation15], 2688  }
  0xaa   : > { %3335 = vsyncadd (%p4020_p8), [#allocation15], 4294964608 }
  0xab   : > { %3337 = dma.done.wait (%p4020_p8), [#allocation18], 512  }
  0xac   : > { %3339 = vsyncadd (%p4020_p8), [#allocation18], 4294966784  ;;  %s4021_s12 = sld [smem:[#allocation28_spill]]  ;;  %p690_p0 = scmp.lt.s32.totalorder %s3374_s27, 1 }
  0xad   : > { %s4022_s15 = sld [smem:[#allocation37_spill]]  ;;  %s684_s17 = sand.u32 1, %s3350_s22  }
  0xae   : > { %s691_s16 = scalar_select %p690_p0, %s3374_s27, 1 }
  0xaf   : > { %s3732_s6 = sshll.u32 %s684_s17, 3  ;;  %s4023_s2 = sld [smem:[#allocation36_spill]] }
  0xb0   : > { %s2836_s5 = smul.u32 10, %s691_s16  ;;  %s2569_s14 = sshll.u32 %s691_s16, 3 }
  0xb1   : > { %s4024_s8 = sld [smem:[#allocation34_spill]] }
  0xb2   : > { %s2567_s13 = sshll.u32 %s4021_s12, 1  ;;  %s687_s18 = sld [smem:[#allocation4 + %s4021_s12]] }
  0xb3   : > { %p704_p10 = scmp.lt.s32.totalorder %s2567_s13, 9  ;;  %s3727_s4 = scalar_lea.vmem %s4022_s15, %s2569_s14 }
  0xb4   : > { %p2570_p12 = scmp.ne.s32.totalorder %s4021_s12, 0 }
  0xb5   : > { %s4050_s13 = smov (!%p704_p10, %s2567_s13), 9 }
  0xb6   : > { %s707_s1 = sadd.s32 %s2836_s5, %s4050_s13  ;;  %s686_s13 = scalar_lea.vmem [#allocation19], %s3732_s6 }
  0xb7   : > { %s2568_s9 = sshll.u32 %s707_s1, 2 }
  0xb8   : > { %p688_p11 = scmp.lt.s32.totalorder %s687_s18, 3  ;;  %s3737_s29 = scalar_lea.vmem %s4023_s2, %s2568_s9 }
  0xba   : > { %s4052_s18 = smov (!%p688_p11, %s687_s18), 3  ;;  %722 = sbr.rel (%p2570_p12) target bundleno = 193 (0xc1), region = 112 }
  0xbb   : > { %s2565_s28 = sshll.u32 %s4052_s18, 1 }
  0xbc   : > { %s696_s7 = sadd.s32 %s2565_s28, %s691_s16 }
  0xbd   : > { %s2566_s25 = sshll.u32 %s696_s7, 3 }
  0xbe   : > { %s698_s15 = scalar_lea.vmem %s4024_s8, %s2566_s25 }
  0xbf   : > { %vm723_vm0 = vcmask 64512   ;;  %v3399_v0 = vmov 0.0  }
  0xc0   : > { %724 = vst.msk [vmem:[#allocation2] sm:$0xff] %vm723_vm0, %v3399_v0 }
  0xc1 PF: > { %v725_v1 = vld [vmem:[%s698_s15] sm:$0xff]  ;;  %v3400_v2 = vmov 0   ;;  %v3401_v8 = vmov 1   ;;  %v3402_v10 = vmov 2   ;;  %v730_v15 = vlaneseq  ;;  %s4025_s2 = scalar_lea.vmem [#allocation5], %s3697_s11  ;;  %s4026_s25 = sld [smem:[#allocation28_spill]] }
  0xc2   : > { %3021 = vset.pattern.permute.xlu1 %v3400_v2  ;;  %v726_v3 = vfloor.f32 %v725_v1  ;;  %3023 = vset.pattern.permute.xlu0 %v3400_v2  ;;  %v855_v11 = vld [vmem:[%s3737_s29] sm:$0xff]  ;;  %v729_v23 = vld [vmem:[%s4025_s2] sm:$0x77]  ;;  %vm904_vm13 = vcmask 64512  }
  0xc3   : > { %v2572_v12 = vcombine.high %v855_v11, %v855_v11  ;;  %v2571_v13 = vcombine.low %v855_v11, %v855_v11  ;;  %v731_v18 = vshrl.u32 %v730_v15, 7 }
  0xc4   : > { %v727_v4 = vsub.f32 %v725_v1, %v726_v3  ;;  %v2837_v5 = vtrunc.f32 %v726_v3 }
  0xc5   : > { %877 = vmatprep.subr.bf16.mxu0 %v2572_v12  ;;  %v732_v19 = vsub.s32 0, %v731_v18  ;;  %v736_v20 = vsub.s32 4, %v731_v18  ;;  %v774_v24 = vsub.s32 1, %v731_v18  ;;  %v778_v25 = vsub.s32 5, %v731_v18 }
  0xc6   : > { %760 = vperm.xlu1 %3021, %v727_v4   ;;  %v2838_v6 = vcvt.f32.s32 %v2837_v5  ;;  %v751_v9 = vsub.f32 1.0, %v727_v4  ;;  %878 = vmatpush1.bf16.xpose.msra.mxu0 %v2571_v13  ;;  %v814_v32 = vsub.s32 2, %v731_v18  ;;  %v818_v33 = vsub.s32 6, %v731_v18 }
  0xc7   : > { %v733_v26 = vrot.slane %v729_v23, %v732_v19  ;;  %v737_v27 = vrot.slane %v729_v23, %v736_v20  ;;  %v775_v29 = vrot.slane %v729_v23, %v774_v24  ;;  %v779_v30 = vrot.slane %v729_v23, %v778_v25  ;;  %v852_v1 = vld [vmem:[#allocation2] sm:$0xff]  ;;  %p2573_p13 = scmp.ne.s32.totalorder %s4026_s25, 4 }
  0xc8   : > { %v752_v7 = vadd.s32 1, %v2838_v6  ;;  %v815_v39 = vrot.slane %v729_v23, %v814_v32  ;;  %v819_v40 = vrot.slane %v729_v23, %v818_v33  ;;  %s4027_s7 = sld [smem:[#allocation40_spill]] (!%p2573_p13) }
  0xc9   : > { %v741_v34 = vrot.slane %v733_v26, %v732_v19  ;;  %v745_v35 = vrot.slane %v737_v27, %v732_v19  ;;  %v783_v36 = vrot.slane %v775_v29, %v774_v24  ;;  %v787_v37 = vrot.slane %v779_v30, %v774_v24  ;;  %s4028_s12 = sld [smem:[#allocation43_spill]] (!%p2573_p13) }
  0xca   : > { %754 = vperm.xlu0 %3023, %v752_v7   ;;  %747 = vperm.xlu1 %3021, %v2838_v6   ;;  %v823_v42 = vrot.slane %v815_v39, %v814_v32  ;;  %v827_v43 = vrot.slane %v819_v40, %v814_v32  ;;  %s4029_s16 = sld [smem:[#allocation47_spill]] (!%p2573_p13) }
  0xce   : > { %3024 = vset.pattern.permute.xlu0 %v3401_v8  ;;  %3022 = vset.pattern.permute.xlu1 %v3401_v8 }
  0xcf   : > { %794 = vperm.xlu0 %3024, %v752_v7   ;;  %789 = vperm.xlu1 %3022, %v2838_v6  }
  0xd3   : > { %799 = vperm.xlu0 %3024, %v727_v4   ;;  %3025 = vset.pattern.permute.xlu1 %v3400_v2 }
  0xd4   : > { %767 = vperm.xlu1 %3025, %v751_v9  }
  0xd7   : > { %805 = vperm.xlu0 %3024, %v751_v9  }
  0xd8   : > { %3026 = vset.pattern.permute.xlu1 %v3402_v10 }
  0xd9   : > { %834 = vperm.xlu1 %3026, %v752_v7  }
  0xdb   : > { %3027 = vset.pattern.permute.xlu0 %v3402_v10 }
  0xdc   : > { %829 = vperm.xlu0 %3027, %v2838_v6  }
  0xdd   : > { %839 = vperm.xlu1 %3026, %v727_v4  }
  0xe1   : > { %845 = vperm.xlu1 %3026, %v751_v9  }
 0x141   : > { %v761_v14 = vpop.permute.xlu1 %760 }
 0x145   : > { %v755_v16 = vpop.permute.xlu0 %754  ;;  %v748_v17 = vpop.permute.xlu1 %747 }
 0x146   : > { %vm756_vm3 = vcmp.eq.s32.totalorder %v741_v34, %v755_v16  ;;  %vm757_vm4 = vcmp.eq.s32.totalorder %v745_v35, %v755_v16  ;;  %vm749_vm7 = vcmp.eq.s32.totalorder %v741_v34, %v748_v17  ;;  %vm750_vm8 = vcmp.eq.s32.totalorder %v745_v35, %v748_v17 }
 0x147   : > { %v763_v50 = vsel %vm756_vm3, %v761_v14, 0.0  ;;  %v764_v51 = vsel %vm757_vm4, %v761_v14, 0.0 }
 0x14a   : > { %v795_v21 = vpop.permute.xlu0 %794  ;;  %v790_v22 = vpop.permute.xlu1 %789 }
 0x14b   : > { %vm796_vm1 = vcmp.eq.s32.totalorder %v783_v36, %v795_v21  ;;  %vm797_vm2 = vcmp.eq.s32.totalorder %v787_v37, %v795_v21  ;;  %vm791_vm5 = vcmp.eq.s32.totalorder %v783_v36, %v790_v22  ;;  %vm792_vm6 = vcmp.eq.s32.totalorder %v787_v37, %v790_v22 }
 0x14e   : > { %v800_v28 = vpop.permute.xlu0 %799 }
 0x14f   : > { %v768_v31 = vpop.permute.xlu1 %767  ;;  %v802_v45 = vsel %vm796_vm1, %v800_v28, 0.0  ;;  %v803_v46 = vsel %vm797_vm2, %v800_v28, 0.0 }
 0x150   : > { %v770_v52 = vsel %vm749_vm7, %v768_v31, %v763_v50  ;;  %v771_v53 = vsel %vm750_vm8, %v768_v31, %v764_v51 }
 0x152   : > { %v806_v38 = vpop.permute.xlu0 %805 }
 0x153   : > { %v808_v48 = vsel %vm791_vm5, %v806_v38, %v802_v45  ;;  %v809_v49 = vsel %vm792_vm6, %v806_v38, %v803_v46 }
 0x154   : > { %v835_v41 = vpop.permute.xlu1 %834  ;;  %v810_v54 = vmul.f32 %v808_v48, %v770_v52  ;;  %v811_v58 = vmul.f32 %v809_v49, %v771_v53 }
 0x155   : > { %vm836_vm11 = vcmp.eq.s32.totalorder %v823_v42, %v835_v41  ;;  %vm837_vm12 = vcmp.eq.s32.totalorder %v827_v43, %v835_v41 }
 0x157   : > { %v830_v44 = vpop.permute.xlu0 %829 }
 0x158   : > { %v840_v47 = vpop.permute.xlu1 %839  ;;  %vm831_vm9 = vcmp.eq.s32.totalorder %v823_v42, %v830_v44  ;;  %vm832_vm10 = vcmp.eq.s32.totalorder %v827_v43, %v830_v44 }
 0x159   : > { %v842_v55 = vsel %vm836_vm11, %v840_v47, 0.0  ;;  %v843_v56 = vsel %vm837_vm12, %v840_v47, 0.0 }
 0x15c   : > { %v846_v57 = vpop.permute.xlu1 %845 }
 0x15d   : > { %v848_v59 = vsel %vm831_vm9, %v846_v57, %v842_v55  ;;  %v849_v60 = vsel %vm832_vm10, %v846_v57, %v843_v56 }
 0x15e   : > { %v850_v61 = vmul.f32 %v848_v59, %v810_v54  ;;  %v851_v62 = vmul.f32 %v849_v60, %v811_v58 }
 0x160   : > { %v853_v63 = vpack.c.bf16 %v850_v61, %v850_v61  ;;  %v854_v0 = vpack.c.bf16 %v851_v62, %v851_v62 }
 0x162   : > { %895 = vmatprep.mubr.bf16.mxu0 %v854_v0 }
 0x163   : > { %896 = vmatmul.mubr.bf16.vlgmr.msra.gmra.mxu0 %v853_v63 }
 0x223   : > { %v897_v2 = vpop.f32.mrf.mxu0 }
 0x224   : > { %v903_v3 = vadd.f32 %v897_v2, %v852_v1 }
 0x225   : > { %v899_v4 = vpop.f32.mrf.mxu0  ;;  %909 = sbr.rel (%p2573_p13) target bundleno = 2943 (0xb7f), region = 116 }
 0x226   : > { %905 = vst.msk [vmem:[#allocation2] sm:$0xff] %vm904_vm13, %v903_v3 }
 0x227   : > { %v900_v5 = vpop.f32.mrf.mxu0 }
 0x229   : > { %v901_v6 = vpop.f32.mrf.mxu0 }
 0x22a   : > { %v912_v7 = vld [vmem:[#allocation8] sm:$0x7]  ;;  %vm924_vm14 = vcmask 1042432   ;;  %v998_v8 = vld [vmem:[%s4027_s7] sm:$0xff]  ;;  %v3403_v9 = vmov 0.0   ;;  %vm920_vm15 = vcmask 23552  }
 0x22b   : > { %2685 = vmatprep.subr.mxu0 %v3403_v9  ;;  %2690 = vmatprep.subr.mxu1 %v3403_v9  ;;  %v911_v10 = vld [vmem:[%s3727_s4] sm:$0xff]  ;;  %vm3404_vm0 = vmmov 0   ;;  %v1081_v13 = vld [vmem:[#allocation13 + $0x10] sm:$0xff]  ;;  %v1080_v14 = vld [vmem:[#allocation13 + $0x8] sm:$0xff]  ;;  %vm1088_vm1 = vcmask 261120  }
 0x22c   : > { %2686 = vmatpush3.msk.msra.mxu0 %vm924_vm14, %v912_v7  ;;  %2687 = vmatprep.mubr.msk.f32.mxu0 %vm3404_vm0, %v3403_v9  ;;  %v1082_v12 = vld [vmem:[#allocation13 + $0x18] sm:$0xff]  ;;  %v1079_v15 = vld [vmem:[#allocation13] sm:$0xff]  ;;  %v1165_v17 = vld [vmem:[#allocation14 + $0x10] sm:$0xff] }
 0x22d   : > { %v3755_v11 = vld [vmem:[#allocation2] sm:$0xff]  ;;  %2691 = vmatpush3.msra.mxu1 %v998_v8  ;;  %2692 = vmatprep.mubr.msk.f32.mxu1 %vm3404_vm0, %v3403_v9  ;;  %v2574_v18 = vld [vmem:[#allocation10] ss:$0 sm:$0xff]  ;;  %v2577_v19 = vld [vmem:[#allocation11] ss:$0 sm:$0xff] }
 0x22e   : > { %2688 = vmatmul.mubr.msk.f32.vlgmr.msra.gmra.mxu0 %vm920_vm15, %v911_v10  ;;  %2693 = vmatmul.mubr.msk.f32.vlgmr.msra.gmra.mxu1 %vm904_vm13, %v3755_v11  ;;  %v1166_v16 = vld [vmem:[#allocation14 + $0x18] sm:$0xff]  ;;  %v1164_v28 = vld [vmem:[#allocation14 + $0x8] sm:$0xff]  ;;  %v1163_v29 = vld [vmem:[#allocation14] sm:$0xff] }
 0x22f   : > { %2695 = vmatprep.subr.mxu0 %v3403_v9  ;;  %2703 = vmatprep.mubr.msk.f32.mxu0 %vm3404_vm0, %v3403_v9  ;;  %v2579_v30 = vld [vmem:[%s4028_s12] ss:$0 sm:$0xff]  ;;  %v2583_v35 = vld [vmem:[%s4027_s7 + $0x8] sm:$0xff]  ;;  %v1328_v37 = vld [vmem:[#allocation13 + $0x30] sm:$0xff] }
 0x230   : > { %2706 = vmatprep.subr.mxu1 %v3403_v9  ;;  %2714 = vmatprep.mubr.msk.f32.mxu1 %vm3404_vm0, %v3403_v9  ;;  %v1329_v36 = vld [vmem:[#allocation13 + $0x38] sm:$0xff]  ;;  %v1327_v38 = vld [vmem:[#allocation13 + $0x28] sm:$0xff]  ;;  %v1326_v39 = vld [vmem:[#allocation13 + $0x20] sm:$0xff] }
 0x231   : > { %2696 = vmatpush3.msra.mxu0 %v1082_v12  ;;  %2707 = vmatpush3.msra.mxu1 %v1166_v16  ;;  %v1413_v40 = vld [vmem:[#allocation14 + $0x38] sm:$0xff]  ;;  %v2581_v41 = vld [vmem:[#allocation16] ss:$0 sm:$0xff]  ;;  %v1412_v52 = vld [vmem:[#allocation14 + $0x30] sm:$0xff] }
 0x232   : > { %2697 = vmatprep.subr.mxu0 %v3403_v9  ;;  %2708 = vmatprep.subr.mxu1 %v3403_v9  ;;  %v2584_v45 = vld [vmem:[#allocation11 + $0x1] ss:$0 sm:$0xff]  ;;  %v1411_v53 = vld [vmem:[#allocation14 + $0x28] sm:$0xff]  ;;  %v1410_v55 = vld [vmem:[#allocation14 + $0x20] sm:$0xff] }
 0x233   : > { %2698 = vmatpush3.msra.mxu0 %v1081_v13  ;;  %2709 = vmatpush3.msra.mxu1 %v1165_v17  ;;  %v2590_v54 = vld [vmem:[%s4027_s7 + $0x10] sm:$0xff]  ;;  %v2586_v56 = vld [vmem:[%s4028_s12 + $0x1] ss:$0 sm:$0xff]  ;;  %v1573_v2 = vld [vmem:[#allocation13 + $0x40] sm:$0xff] }
 0x234   : > { %2699 = vmatprep.subr.mxu0 %v3403_v9  ;;  %2710 = vmatprep.subr.mxu1 %v3403_v9  ;;  %v1576_v62 = vld [vmem:[#allocation13 + $0x58] sm:$0xff]  ;;  %v1575_v0 = vld [vmem:[#allocation13 + $0x50] sm:$0xff]  ;;  %v1574_v1 = vld [vmem:[#allocation13 + $0x48] sm:$0xff] }
 0x235   : > { %2700 = vmatpush3.msra.mxu0 %v1080_v14  ;;  %2711 = vmatpush3.msra.mxu1 %v1164_v28  ;;  %v1660_v3 = vld [vmem:[#allocation14 + $0x58] sm:$0xff]  ;;  %v2588_v4 = vld [vmem:[#allocation16 + $0x1] ss:$0 sm:$0xff]  ;;  %v1658_v16 = vld [vmem:[#allocation14 + $0x48] sm:$0xff] }
 0x236   : > { %2701 = vmatprep.subr.mxu0 %v3403_v9  ;;  %2712 = vmatprep.subr.mxu1 %v3403_v9  ;;  %v2591_v5 = vld [vmem:[#allocation11 + $0x2] ss:$0 sm:$0xff]  ;;  %v2597_v17 = vld [vmem:[%s4027_s7 + $0x18] sm:$0xff]  ;;  %v1821_v28 = vld [vmem:[#allocation13 + $0x68] sm:$0xff] }
 0x237   : > { %2702 = vmatpush3.msra.mxu0 %v1079_v15  ;;  %2713 = vmatpush3.msra.mxu1 %v1163_v29  ;;  %v1659_v15 = vld [vmem:[#allocation14 + $0x50] sm:$0xff]  ;;  %v1820_v29 = vld [vmem:[#allocation13 + $0x60] sm:$0xff] }
 0x238   : > { %2733 = vmatprep.subr.mxu0 %v3403_v9  ;;  %2717 = vmatprep.subr.mxu1 %v3403_v9 }
 0x2ee   : > { %v994_v20 = vpop.f32.mrf.mxu0  ;;  %v1073_v21 = vpop.f32.mrf.mxu1 }
 0x2ef   : > { %v995_v22 = vadd.f32 %v2574_v18, %v994_v20  ;;  %v1074_v23 = vadd.f32 %v2577_v19, %v1073_v21  ;;  %v1657_v18 = vld [vmem:[#allocation14 + $0x40] sm:$0xff]  ;;  %v2593_v19 = vld [vmem:[%s4028_s12 + $0x2] ss:$0 sm:$0xff] }
 0x2f0   : > { %v2689_v24 = vpop.f32.mrf.mxu0  ;;  %v2694_v25 = vpop.f32.mrf.mxu1 }
 0x2f1   : > { %v1077_v26 = vadd.f32 %v1074_v23, %v995_v22  ;;  %v1823_v25 = vld [vmem:[#allocation13 + $0x78] sm:$0xff] }
 0x2f3   : > { %v1078_v27 = vmax.f32 %v1077_v26, 0.0 }
 0x2f5   : > { %2704 = vmatmul.mubr.msk.f32.vlgmr.msra.gmra.mxu0 %vm1088_vm1, %v1078_v27  ;;  %v1822_v27 = vld [vmem:[#allocation13 + $0x70] sm:$0xff] }
 0x2f6   : > { %2741 = vmatprep.mubr.msk.f32.mxu0 %vm3404_vm0, %v3403_v9  ;;  %2734 = vmatpush3.msra.mxu0 %v1413_v40  ;;  %v1906_v40 = vld [vmem:[#allocation14 + $0x70] sm:$0xff] }
 0x2f7   : > { %2735 = vmatprep.subr.mxu0 %v3403_v9 }
 0x2f8   : > { %2736 = vmatpush3.msra.mxu0 %v1412_v52  ;;  %v2068_v52 = vld [vmem:[#allocation13 + $0x88] sm:$0xff] }
 0x2f9   : > { %2737 = vmatprep.subr.mxu0 %v3403_v9 }
 0x2fa   : > { %2738 = vmatpush3.msra.mxu0 %v1411_v53  ;;  %v2067_v53 = vld [vmem:[#allocation13 + $0x80] sm:$0xff] }
 0x2fb   : > { %2739 = vmatprep.subr.mxu0 %v3403_v9 }
 0x2fc   : > { %2740 = vmatpush3.msra.mxu0 %v1410_v55  ;;  %v2602_v55 = vld [vmem:[#allocation16 + $0x3] ss:$0 sm:$0xff] }
 0x2fd   : > { %2749 = vmatprep.subr.mxu0 %v3403_v9 }
 0x3b5   : > { %v1158_v31 = vpop.f32.mrf.mxu0 }
 0x3b6   : > { %v1159_v32 = vadd.f32 %v2579_v30, %v1158_v31  ;;  %v1907_v30 = vld [vmem:[#allocation14 + $0x78] sm:$0xff]  ;;  %v2595_v31 = vld [vmem:[#allocation16 + $0x2] ss:$0 sm:$0xff] }
 0x3b7   : > { %v2705_v33 = vpop.f32.mrf.mxu0 }
 0x3b8   : > { %v1162_v34 = vmax.f32 %v1159_v32, 0.0  ;;  %v2598_v32 = vld [vmem:[#allocation11 + $0x3] ss:$0 sm:$0xff] }
 0x3ba   : > { %2715 = vmatmul.mubr.msk.f32.vlgmr.msra.gmra.mxu1 %vm1088_vm1, %v1162_v34 }
 0x3bb   : > { %2718 = vmatpush3.msra.mxu1 %v2583_v35  ;;  %2719 = vmatprep.mubr.msk.f32.mxu1 %vm3404_vm0, %v3403_v9 }
 0x3bc   : > { %2722 = vmatprep.subr.mxu1 %v3403_v9 }
 0x3be   : > { %2720 = vmatmul.mubr.msk.f32.vlgmr.msra.gmra.mxu1 %vm904_vm13, %v3755_v11 }
 0x3bf   : > { %2730 = vmatprep.mubr.msk.f32.mxu1 %vm3404_vm0, %v3403_v9  ;;  %2723 = vmatpush3.msra.mxu1 %v1329_v36 }
 0x3c0   : > { %2724 = vmatprep.subr.mxu1 %v3403_v9 }
 0x3c1   : > { %2725 = vmatpush3.msra.mxu1 %v1328_v37 }
 0x3c2   : > { %2726 = vmatprep.subr.mxu1 %v3403_v9 }
 0x3c3   : > { %2727 = vmatpush3.msra.mxu1 %v1327_v38 }
 0x3c4   : > { %2728 = vmatprep.subr.mxu1 %v3403_v9 }
 0x3c5   : > { %2729 = vmatpush3.msra.mxu1 %v1326_v39 }
 0x3c6   : > { %2744 = vmatprep.subr.mxu1 %v3403_v9 }
 0x47a   : > { %v1241_v42 = vpop.f32.mrf.mxu1 }
 0x47b   : > { %v1242_v43 = vadd.f32 %v2581_v41, %v1241_v42  ;;  %v1905_v41 = vld [vmem:[#allocation14 + $0x68] sm:$0xff]  ;;  %v2604_v42 = vld [vmem:[%s4027_s7 + $0x20] sm:$0xff] }
 0x47c   : > { %v2716_v44 = vpop.f32.mrf.mxu1 }
 0x47d   : > { %v1245_v47 = vadd.f32 %v1242_v43, %v1077_v26  ;;  %v1904_v43 = vld [vmem:[#allocation14 + $0x60] sm:$0xff]  ;;  %v2600_v44 = vld [vmem:[%s4028_s12 + $0x3] ss:$0 sm:$0xff] }
 0x47e   : > { %v1319_v46 = vpop.f32.mrf.mxu1 }
 0x47f   : > { %v1320_v48 = vadd.f32 %v2584_v45, %v1319_v46 }
 0x480   : > { %v2721_v49 = vpop.f32.mrf.mxu1 }
 0x481   : > { %v1323_v50 = vadd.f32 %v1320_v48, %v1245_v47  ;;  %v2070_v49 = vld [vmem:[#allocation13 + $0x98] sm:$0xff] }
 0x483   : > { %v1324_v51 = vmax.f32 %v1323_v50, 0.0 }
 0x485   : > { %2731 = vmatmul.mubr.msk.f32.vlgmr.msra.gmra.mxu1 %vm1088_vm1, %v1324_v51  ;;  %v2069_v51 = vld [vmem:[#allocation13 + $0x90] sm:$0xff] }
 0x486   : > { %2746 = vmatprep.mubr.msk.f32.mxu1 %vm3404_vm0, %v3403_v9  ;;  %2745 = vmatpush3.msra.mxu1 %v2590_v54  ;;  %v2154_v54 = vld [vmem:[#allocation14 + $0x98] sm:$0xff] }
 0x487   : > { %2760 = vmatprep.subr.mxu1 %v3403_v9 }
 0x489   : > { %2747 = vmatmul.mubr.msk.f32.vlgmr.msra.gmra.mxu1 %vm904_vm13, %v3755_v11 }
 0x48a   : > { %2768 = vmatprep.mubr.msk.f32.mxu1 %vm3404_vm0, %v3403_v9  ;;  %2761 = vmatpush3.msra.mxu1 %v1660_v3  ;;  %v2607_v3 = vld [vmem:[%s4028_s12 + $0x4] ss:$0 sm:$0xff] }
 0x48b   : > { %2762 = vmatprep.subr.mxu1 %v3403_v9 }
 0x48c   : > { %2763 = vmatpush3.msra.mxu1 %v1659_v15 }
 0x48d   : > { %2764 = vmatprep.subr.mxu1 %v3403_v9 }
 0x48e   : > { %2765 = vmatpush3.msra.mxu1 %v1658_v16 }
 0x48f   : > { %2766 = vmatprep.subr.mxu1 %v3403_v9 }
 0x490   : > { %2767 = vmatpush3.msra.mxu1 %v1657_v18 }
 0x491   : > { %2776 = vmatprep.subr.mxu1 %v3403_v9 }
 0x545   : > { %v1404_v57 = vpop.f32.mrf.mxu1 }
 0x546   : > { %v1405_v58 = vadd.f32 %v2586_v56, %v1404_v57  ;;  %v2605_v56 = vld [vmem:[#allocation11 + $0x4] ss:$0 sm:$0xff] }
 0x547   : > { %v2732_v59 = vpop.f32.mrf.mxu1 }
 0x548   : > { %v1408_v60 = vmax.f32 %v1405_v58, 0.0 }
 0x549   : > { %v1566_v61 = vpop.f32.mrf.mxu1 }
 0x54a   : > { %2742 = vmatmul.mubr.msk.f32.vlgmr.msra.gmra.mxu0 %vm1088_vm1, %v1408_v60  ;;  %v1567_v8 = vadd.f32 %v2591_v5, %v1566_v61 }
 0x54b   : > { %2757 = vmatprep.mubr.msk.f32.mxu0 %vm3404_vm0, %v3403_v9  ;;  %v2748_v63 = vpop.f32.mrf.mxu1  ;;  %2750 = vmatpush3.msra.mxu0 %v1576_v62 }
 0x54c   : > { %2751 = vmatprep.subr.mxu0 %v3403_v9 }
 0x54d   : > { %2752 = vmatpush3.msra.mxu0 %v1575_v0  ;;  %v2153_v0 = vld [vmem:[#allocation14 + $0x90] sm:$0xff] }
 0x54e   : > { %2753 = vmatprep.subr.mxu0 %v3403_v9 }
 0x54f   : > { %2754 = vmatpush3.msra.mxu0 %v1574_v1  ;;  %v2152_v1 = vld [vmem:[#allocation14 + $0x88] sm:$0xff] }
 0x550   : > { %2755 = vmatprep.subr.mxu0 %v3403_v9 }
 0x551   : > { %2756 = vmatpush3.msra.mxu0 %v1573_v2  ;;  %v2151_v2 = vld [vmem:[#allocation14 + $0x80] sm:$0xff] }
 0x552   : > { %2771 = vmatprep.subr.mxu0 %v3403_v9 }
 0x60a   : > { %v1488_v6 = vpop.f32.mrf.mxu0 }
 0x60b   : > { %v1489_v7 = vadd.f32 %v2588_v4, %v1488_v6 }
 0x60c   : > { %v2743_v10 = vpop.f32.mrf.mxu0 }
 0x60d   : > { %v1492_v12 = vadd.f32 %v1489_v7, %v1323_v50  ;;  %v2237_v10 = vld [vmem:[#allocation17 + $0x10] sm:$0xff] }
 0x60f   : > { %v1570_v13 = vadd.f32 %v1567_v8, %v1492_v12  ;;  %v2238_v8 = vld [vmem:[#allocation17 + $0x18] sm:$0xff]  ;;  %v2236_v12 = vld [vmem:[#allocation17 + $0x8] sm:$0xff] }
 0x611   : > { %v1571_v14 = vmax.f32 %v1570_v13, 0.0 }
 0x613   : > { %2758 = vmatmul.mubr.msk.f32.vlgmr.msra.gmra.mxu0 %vm1088_vm1, %v1571_v14  ;;  %v2609_v14 = vld [vmem:[#allocation16 + $0x4] ss:$0 sm:$0xff] }
 0x614   : > { %2773 = vmatprep.mubr.msk.f32.mxu0 %vm3404_vm0, %v3403_v9  ;;  %2772 = vmatpush3.msra.mxu0 %v2597_v17 }
 0x615   : > { %2787 = vmatprep.subr.mxu0 %v3403_v9 }
 0x617   : > { %2774 = vmatmul.mubr.msk.f32.vlgmr.msra.gmra.mxu0 %vm904_vm13, %v3755_v11 }
 0x618   : > { %2795 = vmatprep.mubr.msk.f32.mxu0 %vm3404_vm0, %v3403_v9  ;;  %2788 = vmatpush3.msra.mxu0 %v1907_v30 }
 0x619   : > { %2789 = vmatprep.subr.mxu0 %v3403_v9 }
 0x61a   : > { %2790 = vmatpush3.msra.mxu0 %v1906_v40 }
 0x61b   : > { %2791 = vmatprep.subr.mxu0 %v3403_v9 }
 0x61c   : > { %2792 = vmatpush3.msra.mxu0 %v1905_v41 }
 0x61d   : > { %2793 = vmatprep.subr.mxu0 %v3403_v9 }
 0x61e   : > { %2794 = vmatpush3.msra.mxu0 %v1904_v43 }
 0x61f   : > { %2803 = vmatprep.subr.mxu0 %v3403_v9 }
 0x6d3   : > { %v1651_v20 = vpop.f32.mrf.mxu0 }
 0x6d4   : > { %v1652_v21 = vadd.f32 %v2593_v19, %v1651_v20  ;;  %v2611_v20 = vld [vmem:[%s4029_s16] ss:$0 sm:$0xff] }
 0x6d5   : > { %v2759_v22 = vpop.f32.mrf.mxu0 }
 0x6d6   : > { %v1655_v23 = vmax.f32 %v1652_v21, 0.0 }
 0x6d7   : > { %v1813_v24 = vpop.f32.mrf.mxu0 }
 0x6d8   : > { %2769 = vmatmul.mubr.msk.f32.vlgmr.msra.gmra.mxu1 %vm1088_vm1, %v1655_v23  ;;  %v1814_v35 = vadd.f32 %v2598_v32, %v1813_v24 }
 0x6d9   : > { %2784 = vmatprep.mubr.msk.f32.mxu1 %vm3404_vm0, %v3403_v9  ;;  %v2775_v26 = vpop.f32.mrf.mxu0  ;;  %2777 = vmatpush3.msra.mxu1 %v1823_v25 }
 0x6da   : > { %2778 = vmatprep.subr.mxu1 %v3403_v9 }
 0x6db   : > { %2779 = vmatpush3.msra.mxu1 %v1822_v27 }
 0x6dc   : > { %2780 = vmatprep.subr.mxu1 %v3403_v9 }
 0x6dd   : > { %2781 = vmatpush3.msra.mxu1 %v1821_v28 }
 0x6de   : > { %2782 = vmatprep.subr.mxu1 %v3403_v9 }
 0x6df   : > { %2783 = vmatpush3.msra.mxu1 %v1820_v29 }
 0x6e0   : > { %2798 = vmatprep.subr.mxu1 %v3403_v9 }
 0x798   : > { %v1735_v33 = vpop.f32.mrf.mxu1 }
 0x799   : > { %v1736_v34 = vadd.f32 %v2595_v31, %v1735_v33 }
 0x79a   : > { %v2770_v36 = vpop.f32.mrf.mxu1 }
 0x79b   : > { %v1739_v37 = vadd.f32 %v1736_v34, %v1570_v13  ;;  %v2235_v13 = vld [vmem:[#allocation17] sm:$0xff] }
 0x79d   : > { %v1817_v38 = vadd.f32 %v1814_v35, %v1739_v37 }
 0x79f   : > { %v1818_v39 = vmax.f32 %v1817_v38, 0.0 }
 0x7a1   : > { %2785 = vmatmul.mubr.msk.f32.vlgmr.msra.gmra.mxu1 %vm1088_vm1, %v1818_v39 }
 0x7a2   : > { %2800 = vmatprep.mubr.msk.f32.mxu1 %vm3404_vm0, %v3403_v9  ;;  %2799 = vmatpush3.msra.mxu1 %v2604_v42 }
 0x7a3   : > { %2814 = vmatprep.subr.mxu1 %v3403_v9 }
 0x7a5   : > { %2801 = vmatmul.mubr.msk.f32.vlgmr.msra.gmra.mxu1 %vm904_vm13, %v3755_v11 }
 0x7a6   : > { %2822 = vmatprep.mubr.msk.f32.mxu1 %vm3404_vm0, %v3403_v9  ;;  %2815 = vmatpush3.msra.mxu1 %v2154_v54 }
 0x7a7   : > { %2816 = vmatprep.subr.mxu1 %v3403_v9 }
 0x7a8   : > { %2817 = vmatpush3.msra.mxu1 %v2153_v0 }
 0x7a9   : > { %2818 = vmatprep.subr.mxu1 %v3403_v9 }
 0x7aa   : > { %2819 = vmatpush3.msra.mxu1 %v2152_v1 }
 0x7ab   : > { %2820 = vmatprep.subr.mxu1 %v3403_v9 }
 0x7ac   : > { %2821 = vmatpush3.msra.mxu1 %v2151_v2 }
 0x861   : > { %v1898_v45 = vpop.f32.mrf.mxu1 }
 0x862   : > { %v1899_v46 = vadd.f32 %v2600_v44, %v1898_v45 }
 0x863   : > { %v2786_v47 = vpop.f32.mrf.mxu1 }
 0x864   : > { %v1902_v48 = vmax.f32 %v1899_v46, 0.0 }
 0x865   : > { %v2060_v11 = vpop.f32.mrf.mxu1 }
 0x866   : > { %2796 = vmatmul.mubr.msk.f32.vlgmr.msra.gmra.mxu0 %vm1088_vm1, %v1902_v48  ;;  %v2061_v59 = vadd.f32 %v2605_v56, %v2060_v11 }
 0x867   : > { %2811 = vmatprep.mubr.msk.f32.mxu0 %vm3404_vm0, %v3403_v9  ;;  %v2802_v50 = vpop.f32.mrf.mxu1  ;;  %2804 = vmatpush3.msra.mxu0 %v2070_v49 }
 0x868   : > { %2805 = vmatprep.subr.mxu0 %v3403_v9 }
 0x869   : > { %2806 = vmatpush3.msra.mxu0 %v2069_v51 }
 0x86a   : > { %2807 = vmatprep.subr.mxu0 %v3403_v9 }
 0x86b   : > { %2808 = vmatpush3.msra.mxu0 %v2068_v52 }
 0x86c   : > { %2809 = vmatprep.subr.mxu0 %v3403_v9 }
 0x86d   : > { %2810 = vmatpush3.msra.mxu0 %v2067_v53 }
 0x86e   : > { %2825 = vmatprep.subr.mxu0 %v3403_v9 }
 0x926   : > { %v1982_v57 = vpop.f32.mrf.mxu0 }
 0x927   : > { %v1983_v58 = vadd.f32 %v2602_v55, %v1982_v57 }
 0x928   : > { %v2797_v60 = vpop.f32.mrf.mxu0 }
 0x929   : > { %v1986_v61 = vadd.f32 %v1983_v58, %v1817_v38 }
 0x92b   : > { %v2064_v62 = vadd.f32 %v2061_v59, %v1986_v61 }
 0x92d   : > { %v2065_v63 = vmax.f32 %v2064_v62, 0.0 }
 0x92f   : > { %2812 = vmatmul.mubr.msk.f32.vlgmr.msra.gmra.mxu0 %vm1088_vm1, %v2065_v63 }
 0x930   : > { %2833 = vmatprep.mubr.msk.f32.mxu0 %vm3404_vm0, %v3403_v9  ;;  %2826 = vmatpush3.msra.mxu0 %v2238_v8 }
 0x931   : > { %2827 = vmatprep.subr.mxu0 %v3403_v9 }
 0x932   : > { %2828 = vmatpush3.msra.mxu0 %v2237_v10 }
 0x933   : > { %2829 = vmatprep.subr.mxu0 %v3403_v9 }
 0x934   : > { %2830 = vmatpush3.msra.mxu0 %v2236_v12 }
 0x935   : > { %2831 = vmatprep.subr.mxu0 %v3403_v9 }
 0x936   : > { %2832 = vmatpush3.msra.mxu0 %v2235_v13 }
 0x9ef   : > { %v2145_v4 = vpop.f32.mrf.mxu0 }
 0x9f0   : > { %v2146_v5 = vadd.f32 %v2607_v3, %v2145_v4 }
 0x9f1   : > { %v2813_v6 = vpop.f32.mrf.mxu0 }
 0x9f2   : > { %v2149_v7 = vmax.f32 %v2146_v5, 0.0 }
 0x9f4   : > { %2823 = vmatmul.mubr.msk.f32.vlgmr.msra.gmra.mxu1 %vm1088_vm1, %v2149_v7 }
 0xab4   : > { %v2229_v15 = vpop.f32.mrf.mxu1 }
 0xab5   : > { %v2230_v16 = vadd.f32 %v2609_v14, %v2229_v15 }
 0xab6   : > { %v2824_v17 = vpop.f32.mrf.mxu1 }
 0xab7   : > { %v2233_v18 = vadd.f32 %v2230_v16, %v2064_v62 }
 0xab9   : > { %v2234_v19 = vmax.f32 %v2233_v18, 0.0 }
 0xabb   : > { %2834 = vmatmul.mubr.msk.f32.vlgmr.msra.gmra.mxu0 %vm1088_vm1, %v2234_v19 }
 0xb7b   : > { %v2315_v21 = vpop.f32.mrf.mxu0 }
 0xb7c   : > { %v2316_v22 = vadd.f32 %v2611_v20, %v2315_v21 }
 0xb7d   : > { %v2835_v23 = vpop.f32.mrf.mxu0 }
 0xb7e   : > { %2319 = vst [vmem:[%s686_s13] sm:$0xff] %v2316_v22 }
 0xb7f PF: > { %s2614_s5 = sshll.u32 %s3374_s27, 7  ;;  %s4030_s9 = sld [smem:[#allocation48_spill]] }
 0xb80   : > { %s2335_s3 = sshll.u32 %s686_s13, 4  ;;  %s2321_s14 = scalar_lea.sflag [#allocation7], %s684_s17  ;;  %s2336_s3 = int_to_ptr.vmem [resolvable:$true] %s2335_s3 }
 0xb81   : > { %s3248_s8 = scalar_lea.vmem %s2336_s3, 128  ;;  %s3405_s15 = smov [#allocation19]  }
 0xb82   : > { %p3249_p2 = scmp.ne.s32.totalorder %s2336_s3, %s3248_s8  ;;  %s3252_s2 = sshll.u32 %s3405_s15, 4  ;;  %s3253_s2 = int_to_ptr.vmem [resolvable:$false] %s3252_s2 }
 0xb83   : > { %s3254_s25 = scalar_lea.vmem %s3253_s2, 256  ;;  %p3255_p4 = scmp.lt.s32.totalorder %s2336_s3, %s3253_s2 }
 0xb84   : > { %p3250_p1 = pnand %p3249_p2, %p3670_p7  ;;  %p3256_p5 = scmp.lt.s32.totalorder %s3254_s25, %s3248_s8 }
 0xb85   : > { %s2333_s10 = scalar_lea.hbm %s4030_s9, %s2614_s5 }
 0xb86   : > { %p3251_p3 = pneg %p3250_p1  ;;  %p3257_p6 = por %p3256_p5, %p3255_p4 }
 0xb88   : > { %p3258_p8 = pnand %p3257_p6, %p3251_p3 }
 0xb8a   : > { %3261 = shalt.err (!%p3258_p8)
}
 0xb8b   : > { %s3262_s27 = scalar_lea.hbm %s2333_s10, 128  ;;  %s3266_s13 = scalar_lea.hbm %s4030_s9, 256 }
 0xb8c   : > { %p3263_p0 = scmp.ne.s32.totalorder %s2333_s10, %s3262_s27  ;;  %p3267_p12 = scmp.lt.s32.totalorder %s2333_s10, %s4030_s9 }
 0xb8d   : > { %p3268_p13 = scmp.lt.s32.totalorder %s3266_s13, %s3262_s27 }
 0xb8e   : > { %p3264_p10 = pnand %p3263_p0, %p3670_p7 }
 0xb8f   : > { %p3269_p2 = por %p3268_p13, %p3267_p12 }
 0xb90   : > { %p3265_p11 = pneg %p3264_p10 }
 0xb92   : > { %p3270_p1 = pnand %p3269_p2, %p3265_p11 }
 0xb94   : > { %3273 = shalt.err (!%p3270_p1)
}
 0xb95   : > { %2869 = dma.vmem_to_hbm [thread:$0]  (%p3670_p7), %s2336_s3, 128, %s2333_s10, %s2321_s14  }
 0xb96 PF: > { %p2916_p3 = scmp.ge.s32.totalorder %s3386_s30, 2  ;;  %s2347_s11 = sand.u32 1, %s3346_s21  }
 0xb97   : > { %s2348_s20 = scalar_lea.sflag [#allocation7], %s2347_s11 }
 0xb98   : > { %p2898_p4 = pnand %p2916_p3, %p3676_p9 }
 0xb9a   : > { %p2899_p5 = pneg %p2898_p4 }
 0xb9c   : > { %3341 = dma.done.wait (%p2899_p5), %s2348_s20, 128  }
 0xb9d   : > { %3343 = vsyncadd (%p2899_p5), %s2348_s20, 4294967168  ;;  %s39_s30 = sadd.s32 1, %s3386_s30   ;;  %s4031_s26 = sld [smem:[#allocation27_spill]] }
 0xb9e   : > { %p36_p6 = scmp.ge.s32.totalorder %s39_s30, 12   ;;  %s4032_s25 = sld [smem:[#allocation33_spill]] }
 0xb9f   : > { %s4033_s18 = sld [smem:[#allocation29_spill]]  ;;  %s4037_s21 = smov %s3350_s22 }
 0xba0   : > { %s4034_s27 = sld [smem:[#allocation30_spill]]  ;;  %s4038_s22 = smov %s3354_s23 }
 0xba1   : > { %s4035_s28 = sld [smem:[#allocation31_spill]]  ;;  %s4039_s23 = smov %s3668_s24 }
 0xba2   : > { %s4036_s29 = sld [smem:[#allocation32_spill]]  ;;  %s4040_s24 = smov %s3362_s0 }
 0xba3   : > { %s4041_s0 = smov %s4031_s26  ;;  %38 = sbr.rel (!%p36_p6) target bundleno = 33 (0x21), region = 178 }
 0xba5   : > { %s4042_s26 = smov %s4033_s18 }
 0xba8   :  { %2353 = vsyncpa [#allocation6], 1 }
 0xba9   :  { %2355 = vsyncpa [#allocation6 + $0x1], 1 }
 0xbaa   :  { %2356 = vsyncpa [#allocation9], 1 }
 0xbab   :  { %2357 = vsyncpa [#allocation12], 1 }
 0xbac   :  { %2358 = vsyncpa [#allocation15], 1 }
 0xbad   :  { %2359 = vsyncpa [#allocation18], 1 }
 0xbae   :  { %2360 = vsyncpa [#allocation7], 1 }
 0xbaf   :  { %2362 = vsyncpa [#allocation7 + $0x1], 1 }

</bundles_post_ra>
